<compile_context>
chip_gen: v7x
topology: tpu7x:2x2x1
jax: 0.10.0
libtpu: 0.0.40
codegen_flags: <defaults>
</compile_context>

<pallas_src>
import jax
import jax.numpy as jnp
from jax import lax
from jax.experimental import pallas as pl
from jax.experimental.pallas import tpu as pltpu

N_EMBD = 128
N_HEAD = 4
HEAD_SIZE = N_EMBD // N_HEAD      # 32
BLOCK_SIZE = 40                   # max sequence length (causal mask buffer size)
LN_EPS = 1e-5
NEG_BIG = -1e30                   # finite "masked" score (safe vs. -inf/NaN)


def _layernorm(x, gamma, beta):
    # x: (R, C) f32, gamma/beta: (1, C) -> broadcast over rows
    mean = jnp.mean(x, axis=-1, keepdims=True)
    var = jnp.mean(jnp.square(x - mean), axis=-1, keepdims=True)
    return (x - mean) * lax.rsqrt(var + LN_EPS) * gamma + beta


def block_kernel(x_ref, bias_ref, wqkv_ref, wo_ref, bo_ref,
                 w1_ref, b1_ref, w2_ref, b2_ref,
                 g1_ref, be1_ref, g2_ref, be2_ref,
                 o_ref, heads_ref):
    BB, T, C = x_ref.shape
    D = HEAD_SIZE
    R = BB * T
    # NOTE: T must be a multiple of 8 (or == full T) for this reshape to stay a
    # view; T=8 / T=40 are both fine.
    x = x_ref[...].reshape(R, C)                    # f32 rows (residual stream)

    # ---- x = x + sa(ln1(x)) ----
    xn = _layernorm(x, g1_ref[...], be1_ref[...])
    # fused QKV projection: one (R, C) @bf16 (C, 3C) matmul, f32 accumulate
    qkv = jnp.dot(xn.astype(jnp.bfloat16), wqkv_ref[...],
                  preferred_element_type=jnp.float32)          # (R, 3C) f32
    qkv_b = qkv.astype(jnp.bfloat16)
    q3 = qkv_b[:, :C].reshape(BB, T, C)             # 1/sqrt(d) already in wq
    k3 = qkv_b[:, C:2 * C].reshape(BB, T, C)
    v3 = qkv_b[:, 2 * C:].reshape(BB, T, C)

    bias = bias_ref[...]                            # (T, T) additive causal mask

    # per-head attention (static unroll), batched over the BB sequences;
    # head outputs staged into a bf16 VMEM scratch at static lane offsets
    for h in range(N_HEAD):
        sl = slice(h * D, (h + 1) * D)
        qh = q3[:, :, sl]                           # (BB, T, D) bf16
        kh = k3[:, :, sl]
        vh = v3[:, :, sl]
        # scores without materializing k.T: contract last dims directly
        s = jnp.einsum('btd,bsd->bts', qh, kh,
                       preferred_element_type=jnp.float32) + bias   # (BB, T, T) f32
        s = s - jnp.max(s, axis=-1, keepdims=True)
        p = jnp.exp(s)
        p = p * pl.reciprocal(jnp.sum(p, axis=-1, keepdims=True), approx=True)
        oh = jnp.einsum('bts,bsd->btd', p.astype(jnp.bfloat16), vh,
                        preferred_element_type=jnp.float32)         # (BB, T, D)
        heads_ref[:, sl] = oh.reshape(R, D).astype(jnp.bfloat16)

    # single K=128 output projection over all heads
    attn = jnp.dot(heads_ref[...], wo_ref[...],
                   preferred_element_type=jnp.float32)               # (R, C) f32
    # dropout(p=0.5) after projection is identity in eval mode
    x1 = x + attn + bo_ref[...]

    # ---- x = x + ffwd(ln2(x)) ----
    xn2 = _layernorm(x1, g2_ref[...], be2_ref[...])
    h1 = jnp.dot(xn2.astype(jnp.bfloat16), w1_ref[...],
                 preferred_element_type=jnp.float32) + b1_ref[...]
    h1 = jnp.maximum(h1, 0.0)                       # ReLU
    ff = jnp.dot(h1.astype(jnp.bfloat16), w2_ref[...],
                 preferred_element_type=jnp.float32) + b2_ref[...]
    # dropout(p=0.5) in FFN is identity in eval mode
    o_ref[...] = (x1 + ff).reshape(BB, T, C)


def block_forward(x, params, *, target_rows=1024):
    """x: (B, T, C) f32. params: list from init_params()."""
    B, T, C = x.shape
    assert C == N_EMBD and T <= BLOCK_SIZE
    wq, wk, wv, wo, bo, w1, b1, w2, b2, g1, be1, g2, be2 = params

    # Pack Q/K/V weights (scale folded into wq) and pre-cast matmul weights to
    # bf16 once in the wrapper; biases / LN params stay f32 (exact adds).
    scale = HEAD_SIZE ** (-0.5)
    wqkv = jnp.concatenate([wq * scale, wk, wv], axis=1).astype(jnp.bfloat16)
    wo_b = wo.astype(jnp.bfloat16)
    w1_b = w1.astype(jnp.bfloat16)
    w2_b = w2.astype(jnp.bfloat16)

    # additive causal bias, built once on host side of the call
    rows = jnp.arange(T)[:, None]
    cols = jnp.arange(T)[None, :]
    bias = jnp.where(cols <= rows, 0.0, NEG_BIG).astype(jnp.float32)

    # Batch-chunk size: ~target_rows MXU rows per step, grid via cdiv + padding
    # (no divisor degeneracy for awkward B). Keep >=2 grid steps when B > 1 so
    # dimension_semantics=("parallel",) can shard across v7x's two TensorCores.
    BB = max(1, min(B, target_rows // T))
    if B > 1 and pl.cdiv(B, BB) < 2:
        BB = pl.cdiv(B, 2)
    grid_len = pl.cdiv(B, BB)
    B_pad = grid_len * BB
    xp = x if B_pad == B else jnp.pad(x, ((0, B_pad - B), (0, 0), (0, 0)))

    flat = [bias, wqkv, wo_b, bo, w1_b, b1, w2_b, b2, g1, be1, g2, be2]

    def full_spec(p):
        nd = p.ndim
        return pl.BlockSpec(p.shape, lambda b, _nd=nd: (0,) * _nd)

    in_specs = [pl.BlockSpec((BB, T, C), lambda b: (b, 0, 0))] + \
               [full_spec(p) for p in flat]

    out = pl.pallas_call(
        block_kernel,
        out_shape=jax.ShapeDtypeStruct((B_pad, T, C), x.dtype),
        grid=(grid_len,),
        in_specs=in_specs,
        out_specs=pl.BlockSpec((BB, T, C), lambda b: (b, 0, 0)),
        scratch_shapes=[pltpu.VMEM((BB * T, C), jnp.bfloat16)],
        compiler_params=pltpu.CompilerParams(
            dimension_semantics=("parallel",),
            vmem_limit_bytes=48 * 1024 * 1024),
    )(xp, *flat)
    return out if B_pad == B else out[:B]


def init_params(key):
    ks = jax.random.split(key, 10)
    s = 0.02
    wq = jax.random.normal(ks[0], (N_EMBD, N_EMBD), jnp.float32) * s
    wk = jax.random.normal(ks[1], (N_EMBD, N_EMBD), jnp.float32) * s
    wv = jax.random.normal(ks[2], (N_EMBD, N_EMBD), jnp.float32) * s
    wo = jax.random.normal(ks[3], (N_EMBD, N_EMBD), jnp.float32) * s
    bo = jax.random.normal(ks[4], (1, N_EMBD), jnp.float32) * s
    w1 = jax.random.normal(ks[5], (N_EMBD, 4 * N_EMBD), jnp.float32) * s
    b1 = jax.random.normal(ks[6], (1, 4 * N_EMBD), jnp.float32) * s
    w2 = jax.random.normal(ks[7], (4 * N_EMBD, N_EMBD), jnp.float32) * s
    b2 = jax.random.normal(ks[8], (1, N_EMBD), jnp.float32) * s
    g1 = jnp.ones((1, N_EMBD), jnp.float32)         # LayerNorm default init
    be1 = jnp.zeros((1, N_EMBD), jnp.float32)
    g2 = jnp.ones((1, N_EMBD), jnp.float32)
    be2 = jnp.zeros((1, N_EMBD), jnp.float32)
    return [wq, wk, wv, wo, bo, w1, b1, w2, b2, g1, be1, g2, be2]


def reference(x, params):
    wq, wk, wv, wo, bo, w1, b1, w2, b2, g1, be1, g2, be2 = params
    B, T, C = x.shape

    def ln(z, g, b):
        m = z.mean(-1, keepdims=True)
        v = ((z - m) ** 2).mean(-1, keepdims=True)
        return (z - m) / jnp.sqrt(v + LN_EPS) * g + b

    xn = ln(x, g1[0], be1[0])
    q = (xn @ wq).reshape(B, T, N_HEAD, HEAD_SIZE).transpose(0, 2, 1, 3)
    k = (xn @ wk).reshape(B, T, N_HEAD, HEAD_SIZE).transpose(0, 2, 1, 3)
    v = (xn @ wv).reshape(B, T, N_HEAD, HEAD_SIZE).transpose(0, 2, 1, 3)
    s = q @ k.transpose(0, 1, 3, 2) * HEAD_SIZE ** (-0.5)
    tril = jnp.tril(jnp.ones((T, T), bool))
    s = jnp.where(tril, s, -jnp.inf)
    p = jax.nn.softmax(s, axis=-1)
    out = (p @ v).transpose(0, 2, 1, 3).reshape(B, T, C)
    x1 = x + out @ wo + bo[0]
    xn2 = ln(x1, g2[0], be2[0])
    ff = jnp.maximum(xn2 @ w1 + b1[0], 0.0) @ w2 + b2[0]
    return x1 + ff


if __name__ == "__main__":
    key = jax.random.PRNGKey(0)
    kx, kp = jax.random.split(key)
    B, T = 2, 8                                     # T <= block_size (40)
    x = jax.random.normal(kx, (B, T, N_EMBD), jnp.float32)
    params = init_params(kp)

    out = jax.block_until_ready(block_forward(x, params))
    ref = jax.block_until_ready(reference(x, params))

    assert out.shape == (B, T, N_EMBD)
    err = float(jnp.max(jnp.abs(out - ref)))
    # bf16 matmul operands + approx reciprocal -> ~1e-2-class tolerance
    assert err < 2e-2, err
    # TODO(synk): dropout (p=0.5) is identity here (eval mode); training-mode
    # dropout would need pltpu.prng_seed/prng_random_bits.
    print("KERNEL_OK")
</pallas_src>

<mosaic_0001>
module attributes {stable_mosaic.version = 11 : i64} {
  func.func @block_kernel(%arg0: i32, %arg1: memref<1x8x128xf32, #tpu.memory_space<vmem>>, %arg2: memref<8x8xf32, #tpu.memory_space<vmem>>, %arg3: memref<128x384xbf16, #tpu.memory_space<vmem>>, %arg4: memref<128x128xbf16, #tpu.memory_space<vmem>>, %arg5: memref<1x128xf32, #tpu.memory_space<vmem>>, %arg6: memref<128x512xbf16, #tpu.memory_space<vmem>>, %arg7: memref<1x512xf32, #tpu.memory_space<vmem>>, %arg8: memref<512x128xbf16, #tpu.memory_space<vmem>>, %arg9: memref<1x128xf32, #tpu.memory_space<vmem>>, %arg10: memref<1x128xf32, #tpu.memory_space<vmem>>, %arg11: memref<1x128xf32, #tpu.memory_space<vmem>>, %arg12: memref<1x128xf32, #tpu.memory_space<vmem>>, %arg13: memref<1x128xf32, #tpu.memory_space<vmem>>, %arg14: memref<1x8x128xf32, #tpu.memory_space<vmem>>, %arg15: memref<8x128xbf16, #tpu.memory_space<vmem>>) attributes {dimension_semantics = [#tpu.dimension_semantics<parallel>], iteration_bounds = array<i64: 2>, scalar_prefetch = 0 : i64, scratch_operands = 1 : i64, tpu.core_type = #tpu.core_type<tc>, window_params = [{transform_indices = @transform_0, window_bounds = array<i64: 1, 8, 128>}, {pipeline_mode = #tpu.pipeline_mode<synchronous>, transform_indices = @transform_1, window_bounds = array<i64: 8, 8>}, {pipeline_mode = #tpu.pipeline_mode<synchronous>, transform_indices = @transform_2, window_bounds = array<i64: 128, 384>}, {pipeline_mode = #tpu.pipeline_mode<synchronous>, transform_indices = @transform_3, window_bounds = array<i64: 128, 128>}, {pipeline_mode = #tpu.pipeline_mode<synchronous>, transform_indices = @transform_4, window_bounds = array<i64: 1, 128>}, {pipeline_mode = #tpu.pipeline_mode<synchronous>, transform_indices = @transform_5, window_bounds = array<i64: 128, 512>}, {pipeline_mode = #tpu.pipeline_mode<synchronous>, transform_indices = @transform_6, window_bounds = array<i64: 1, 512>}, {pipeline_mode = #tpu.pipeline_mode<synchronous>, transform_indices = @transform_7, window_bounds = array<i64: 512, 128>}, {pipeline_mode = #tpu.pipeline_mode<synchronous>, transform_indices = @transform_8, window_bounds = array<i64: 1, 128>}, {pipeline_mode = #tpu.pipeline_mode<synchronous>, transform_indices = @transform_9, window_bounds = array<i64: 1, 128>}, {pipeline_mode = #tpu.pipeline_mode<synchronous>, transform_indices = @transform_10, window_bounds = array<i64: 1, 128>}, {pipeline_mode = #tpu.pipeline_mode<synchronous>, transform_indices = @transform_11, window_bounds = array<i64: 1, 128>}, {pipeline_mode = #tpu.pipeline_mode<synchronous>, transform_indices = @transform_12, window_bounds = array<i64: 1, 128>}, {transform_indices = @transform_13, window_bounds = array<i64: 1, 8, 128>}]} {
    %c0 = arith.constant 0 : index
    %c0_0 = arith.constant 0 : index
    %c0_1 = arith.constant 0 : index
    %0 = vector.load %arg1[%c0, %c0_0, %c0_1] : memref<1x8x128xf32, #tpu.memory_space<vmem>>, vector<1x8x128xf32>
    %1 = vector.shape_cast %0 : vector<1x8x128xf32> to vector<8x128xf32>
    %c0_2 = arith.constant 0 : index
    %c0_3 = arith.constant 0 : index
    %2 = vector.load %arg10[%c0_2, %c0_3] : memref<1x128xf32, #tpu.memory_space<vmem>>, vector<1x128xf32>
    %c0_4 = arith.constant 0 : index
    %c0_5 = arith.constant 0 : index
    %3 = vector.load %arg11[%c0_4, %c0_5] : memref<1x128xf32, #tpu.memory_space<vmem>>, vector<1x128xf32>
    %cst = arith.constant dense<0.000000e+00> : vector<8xf32>
    %4 = vector.multi_reduction <add>, %1, %cst [1] : vector<8x128xf32> to vector<8xf32>
    %5 = vector.shape_cast %4 : vector<8xf32> to vector<8x1xf32>
    %cst_6 = arith.constant 1.280000e+02 : f32
    %6 = vector.broadcast %cst_6 : f32 to vector<8x1xf32>
    %7 = arith.divf %5, %6 : vector<8x1xf32>
    %8 = vector.broadcast %7 : vector<8x1xf32> to vector<8x128xf32>
    %9 = arith.subf %1, %8 : vector<8x128xf32>
    %10 = arith.mulf %9, %9 : vector<8x128xf32>
    %cst_7 = arith.constant dense<0.000000e+00> : vector<8xf32>
    %11 = vector.multi_reduction <add>, %10, %cst_7 [1] : vector<8x128xf32> to vector<8xf32>
    %12 = vector.shape_cast %11 : vector<8xf32> to vector<8x1xf32>
    %cst_8 = arith.constant 1.280000e+02 : f32
    %13 = vector.broadcast %cst_8 : f32 to vector<8x1xf32>
    %14 = arith.divf %12, %13 : vector<8x1xf32>
    %15 = vector.broadcast %7 : vector<8x1xf32> to vector<8x128xf32>
    %16 = arith.subf %1, %15 : vector<8x128xf32>
    %cst_9 = arith.constant 9.99999974E-6 : f32
    %17 = vector.broadcast %cst_9 : f32 to vector<8x1xf32>
    %18 = arith.addf %14, %17 : vector<8x1xf32>
    %19 = math.rsqrt %18 : vector<8x1xf32>
    %20 = vector.broadcast %19 : vector<8x1xf32> to vector<8x128xf32>
    %21 = arith.mulf %16, %20 : vector<8x128xf32>
    %22 = vector.broadcast %2 : vector<1x128xf32> to vector<8x128xf32>
    %23 = arith.mulf %21, %22 : vector<8x128xf32>
    %24 = vector.broadcast %3 : vector<1x128xf32> to vector<8x128xf32>
    %25 = arith.addf %23, %24 : vector<8x128xf32>
    %26 = arith.truncf %25 : vector<8x128xf32> to vector<8x128xbf16>
    %c0_10 = arith.constant 0 : index
    %c0_11 = arith.constant 0 : index
    %27 = vector.load %arg3[%c0_10, %c0_11] : memref<128x384xbf16, #tpu.memory_space<vmem>>, vector<128x384xbf16>
    %cst_12 = arith.constant dense<0.000000e+00> : vector<8x384xf32>
    %28 = tpu.matmul %26, %27, %cst_12 {dimension_numbers = #tpu.dot_dimension_numbers<[1], [0], [0], [1], [0, 0, 1, 1], [], []>} : vector<8x128xbf16>, vector<128x384xbf16>, vector<8x384xf32> -> vector<8x384xf32>
    %29 = arith.truncf %28 : vector<8x384xf32> to vector<8x384xbf16>
    %30 = vector.extract_strided_slice %29 {offsets = [0, 0], sizes = [8, 128], strides = [1, 1]} : vector<8x384xbf16> to vector<8x128xbf16>
    %31 = vector.shape_cast %30 : vector<8x128xbf16> to vector<1x8x128xbf16>
    %32 = vector.extract_strided_slice %29 {offsets = [0, 128], sizes = [8, 128], strides = [1, 1]} : vector<8x384xbf16> to vector<8x128xbf16>
    %33 = vector.shape_cast %32 : vector<8x128xbf16> to vector<1x8x128xbf16>
    %34 = vector.extract_strided_slice %29 {offsets = [0, 256], sizes = [8, 128], strides = [1, 1]} : vector<8x384xbf16> to vector<8x128xbf16>
    %35 = vector.shape_cast %34 : vector<8x128xbf16> to vector<1x8x128xbf16>
    %c0_13 = arith.constant 0 : index
    %c0_14 = arith.constant 0 : index
    %36 = vector.load %arg2[%c0_13, %c0_14] : memref<8x8xf32, #tpu.memory_space<vmem>>, vector<8x8xf32>
    %37 = vector.extract_strided_slice %31 {offsets = [0, 0, 0], sizes = [1, 8, 32], strides = [1, 1, 1]} : vector<1x8x128xbf16> to vector<1x8x32xbf16>
    %38 = vector.extract_strided_slice %33 {offsets = [0, 0, 0], sizes = [1, 8, 32], strides = [1, 1, 1]} : vector<1x8x128xbf16> to vector<1x8x32xbf16>
    %39 = vector.extract_strided_slice %35 {offsets = [0, 0, 0], sizes = [1, 8, 32], strides = [1, 1, 1]} : vector<1x8x128xbf16> to vector<1x8x32xbf16>
    "tpu.trace_start"() <{level = 10 : i32, message = "btd,bsd->bts"}> : () -> ()
    %cst_15 = arith.constant dense<0.000000e+00> : vector<1x8x8xf32>
    %40 = tpu.matmul %37, %38, %cst_15 {dimension_numbers = #tpu.dot_dimension_numbers<[2], [2], [1], [1], [0, 0, 0, 1, 1, 1], [0], [0]>} : vector<1x8x32xbf16>, vector<1x8x32xbf16>, vector<1x8x8xf32> -> vector<1x8x8xf32>
    "tpu.trace_stop"() : () -> ()
    %41 = vector.shape_cast %36 : vector<8x8xf32> to vector<1x8x8xf32>
    %42 = arith.addf %40, %41 : vector<1x8x8xf32>
    %cst_16 = arith.constant dense<0xFF800000> : vector<1x8xf32>
    %43 = vector.multi_reduction <maximumf>, %42, %cst_16 [2] : vector<1x8x8xf32> to vector<1x8xf32>
    %44 = vector.shape_cast %43 : vector<1x8xf32> to vector<1x8x1xf32>
    %45 = vector.broadcast %44 : vector<1x8x1xf32> to vector<1x8x8xf32>
    %46 = arith.subf %42, %45 : vector<1x8x8xf32>
    %47 = math.exp %46 : vector<1x8x8xf32>
    %cst_17 = arith.constant dense<0.000000e+00> : vector<1x8xf32>
    %48 = vector.multi_reduction <add>, %47, %cst_17 [2] : vector<1x8x8xf32> to vector<1x8xf32>
    %49 = vector.shape_cast %48 : vector<1x8xf32> to vector<1x8x1xf32>
    %50 = tpu.reciprocal %49 {approx = true} : vector<1x8x1xf32> -> vector<1x8x1xf32>
    %51 = vector.broadcast %50 : vector<1x8x1xf32> to vector<1x8x8xf32>
    %52 = arith.mulf %47, %51 : vector<1x8x8xf32>
    %53 = arith.truncf %52 : vector<1x8x8xf32> to vector<1x8x8xbf16>
    "tpu.trace_start"() <{level = 10 : i32, message = "bts,bsd->btd"}> : () -> ()
    %cst_18 = arith.constant dense<0.000000e+00> : vector<1x8x32xf32>
    %54 = tpu.matmul %53, %39, %cst_18 {dimension_numbers = #tpu.dot_dimension_numbers<[2], [1], [1], [2], [0, 0, 0, 1, 1, 2], [0], [0]>} : vector<1x8x8xbf16>, vector<1x8x32xbf16>, vector<1x8x32xf32> -> vector<1x8x32xf32>
    "tpu.trace_stop"() : () -> ()
    %55 = vector.shape_cast %54 : vector<1x8x32xf32> to vector<8x32xf32>
    %56 = arith.truncf %55 : vector<8x32xf32> to vector<8x32xbf16>
    %c0_19 = arith.constant 0 : index
    %c0_20 = arith.constant 0 : index
    %57 = vector.load %arg15[%c0_19, %c0_20] : memref<8x128xbf16, #tpu.memory_space<vmem>>, vector<8x32xbf16>
    tpu.vector_store %arg15[%c0_19, %c0_20], %56 {strides = array<i32>} : memref<8x128xbf16, #tpu.memory_space<vmem>>, vector<8x32xbf16>,
    %58 = vector.extract_strided_slice %31 {offsets = [0, 0, 32], sizes = [1, 8, 32], strides = [1, 1, 1]} : vector<1x8x128xbf16> to vector<1x8x32xbf16>
    %59 = vector.extract_strided_slice %33 {offsets = [0, 0, 32], sizes = [1, 8, 32], strides = [1, 1, 1]} : vector<1x8x128xbf16> to vector<1x8x32xbf16>
    %60 = vector.extract_strided_slice %35 {offsets = [0, 0, 32], sizes = [1, 8, 32], strides = [1, 1, 1]} : vector<1x8x128xbf16> to vector<1x8x32xbf16>
    "tpu.trace_start"() <{level = 10 : i32, message = "btd,bsd->bts"}> : () -> ()
    %cst_21 = arith.constant dense<0.000000e+00> : vector<1x8x8xf32>
    %61 = tpu.matmul %58, %59, %cst_21 {dimension_numbers = #tpu.dot_dimension_numbers<[2], [2], [1], [1], [0, 0, 0, 1, 1, 1], [0], [0]>} : vector<1x8x32xbf16>, vector<1x8x32xbf16>, vector<1x8x8xf32> -> vector<1x8x8xf32>
    "tpu.trace_stop"() : () -> ()
    %62 = vector.shape_cast %36 : vector<8x8xf32> to vector<1x8x8xf32>
    %63 = arith.addf %61, %62 : vector<1x8x8xf32>
    %cst_22 = arith.constant dense<0xFF800000> : vector<1x8xf32>
    %64 = vector.multi_reduction <maximumf>, %63, %cst_22 [2] : vector<1x8x8xf32> to vector<1x8xf32>
    %65 = vector.shape_cast %64 : vector<1x8xf32> to vector<1x8x1xf32>
    %66 = vector.broadcast %65 : vector<1x8x1xf32> to vector<1x8x8xf32>
    %67 = arith.subf %63, %66 : vector<1x8x8xf32>
    %68 = math.exp %67 : vector<1x8x8xf32>
    %cst_23 = arith.constant dense<0.000000e+00> : vector<1x8xf32>
    %69 = vector.multi_reduction <add>, %68, %cst_23 [2] : vector<1x8x8xf32> to vector<1x8xf32>
    %70 = vector.shape_cast %69 : vector<1x8xf32> to vector<1x8x1xf32>
    %71 = tpu.reciprocal %70 {approx = true} : vector<1x8x1xf32> -> vector<1x8x1xf32>
    %72 = vector.broadcast %71 : vector<1x8x1xf32> to vector<1x8x8xf32>
    %73 = arith.mulf %68, %72 : vector<1x8x8xf32>
    %74 = arith.truncf %73 : vector<1x8x8xf32> to vector<1x8x8xbf16>
    "tpu.trace_start"() <{level = 10 : i32, message = "bts,bsd->btd"}> : () -> ()
    %cst_24 = arith.constant dense<0.000000e+00> : vector<1x8x32xf32>
    %75 = tpu.matmul %74, %60, %cst_24 {dimension_numbers = #tpu.dot_dimension_numbers<[2], [1], [1], [2], [0, 0, 0, 1, 1, 2], [0], [0]>} : vector<1x8x8xbf16>, vector<1x8x32xbf16>, vector<1x8x32xf32> -> vector<1x8x32xf32>
    "tpu.trace_stop"() : () -> ()
    %76 = vector.shape_cast %75 : vector<1x8x32xf32> to vector<8x32xf32>
    %77 = arith.truncf %76 : vector<8x32xf32> to vector<8x32xbf16>
    %c0_25 = arith.constant 0 : index
    %c32 = arith.constant 32 : index
    %78 = vector.load %arg15[%c0_25, %c32] : memref<8x128xbf16, #tpu.memory_space<vmem>>, vector<8x32xbf16>
    tpu.vector_store %arg15[%c0_25, %c32], %77 {strides = array<i32>} : memref<8x128xbf16, #tpu.memory_space<vmem>>, vector<8x32xbf16>,
    %79 = vector.extract_strided_slice %31 {offsets = [0, 0, 64], sizes = [1, 8, 32], strides = [1, 1, 1]} : vector<1x8x128xbf16> to vector<1x8x32xbf16>
    %80 = vector.extract_strided_slice %33 {offsets = [0, 0, 64], sizes = [1, 8, 32], strides = [1, 1, 1]} : vector<1x8x128xbf16> to vector<1x8x32xbf16>
    %81 = vector.extract_strided_slice %35 {offsets = [0, 0, 64], sizes = [1, 8, 32], strides = [1, 1, 1]} : vector<1x8x128xbf16> to vector<1x8x32xbf16>
    "tpu.trace_start"() <{level = 10 : i32, message = "btd,bsd->bts"}> : () -> ()
    %cst_26 = arith.constant dense<0.000000e+00> : vector<1x8x8xf32>
    %82 = tpu.matmul %79, %80, %cst_26 {dimension_numbers = #tpu.dot_dimension_numbers<[2], [2], [1], [1], [0, 0, 0, 1, 1, 1], [0], [0]>} : vector<1x8x32xbf16>, vector<1x8x32xbf16>, vector<1x8x8xf32> -> vector<1x8x8xf32>
    "tpu.trace_stop"() : () -> ()
    %83 = vector.shape_cast %36 : vector<8x8xf32> to vector<1x8x8xf32>
    %84 = arith.addf %82, %83 : vector<1x8x8xf32>
    %cst_27 = arith.constant dense<0xFF800000> : vector<1x8xf32>
    %85 = vector.multi_reduction <maximumf>, %84, %cst_27 [2] : vector<1x8x8xf32> to vector<1x8xf32>
    %86 = vector.shape_cast %85 : vector<1x8xf32> to vector<1x8x1xf32>
    %87 = vector.broadcast %86 : vector<1x8x1xf32> to vector<1x8x8xf32>
    %88 = arith.subf %84, %87 : vector<1x8x8xf32>
    %89 = math.exp %88 : vector<1x8x8xf32>
    %cst_28 = arith.constant dense<0.000000e+00> : vector<1x8xf32>
    %90 = vector.multi_reduction <add>, %89, %cst_28 [2] : vector<1x8x8xf32> to vector<1x8xf32>
    %91 = vector.shape_cast %90 : vector<1x8xf32> to vector<1x8x1xf32>
    %92 = tpu.reciprocal %91 {approx = true} : vector<1x8x1xf32> -> vector<1x8x1xf32>
    %93 = vector.broadcast %92 : vector<1x8x1xf32> to vector<1x8x8xf32>
    %94 = arith.mulf %89, %93 : vector<1x8x8xf32>
    %95 = arith.truncf %94 : vector<1x8x8xf32> to vector<1x8x8xbf16>
    "tpu.trace_start"() <{level = 10 : i32, message = "bts,bsd->btd"}> : () -> ()
    %cst_29 = arith.constant dense<0.000000e+00> : vector<1x8x32xf32>
    %96 = tpu.matmul %95, %81, %cst_29 {dimension_numbers = #tpu.dot_dimension_numbers<[2], [1], [1], [2], [0, 0, 0, 1, 1, 2], [0], [0]>} : vector<1x8x8xbf16>, vector<1x8x32xbf16>, vector<1x8x32xf32> -> vector<1x8x32xf32>
    "tpu.trace_stop"() : () -> ()
    %97 = vector.shape_cast %96 : vector<1x8x32xf32> to vector<8x32xf32>
    %98 = arith.truncf %97 : vector<8x32xf32> to vector<8x32xbf16>
    %c0_30 = arith.constant 0 : index
    %c64 = arith.constant 64 : index
    %99 = vector.load %arg15[%c0_30, %c64] : memref<8x128xbf16, #tpu.memory_space<vmem>>, vector<8x32xbf16>
    tpu.vector_store %arg15[%c0_30, %c64], %98 {strides = array<i32>} : memref<8x128xbf16, #tpu.memory_space<vmem>>, vector<8x32xbf16>,
    %100 = vector.extract_strided_slice %31 {offsets = [0, 0, 96], sizes = [1, 8, 32], strides = [1, 1, 1]} : vector<1x8x128xbf16> to vector<1x8x32xbf16>
    %101 = vector.extract_strided_slice %33 {offsets = [0, 0, 96], sizes = [1, 8, 32], strides = [1, 1, 1]} : vector<1x8x128xbf16> to vector<1x8x32xbf16>
    %102 = vector.extract_strided_slice %35 {offsets = [0, 0, 96], sizes = [1, 8, 32], strides = [1, 1, 1]} : vector<1x8x128xbf16> to vector<1x8x32xbf16>
    "tpu.trace_start"() <{level = 10 : i32, message = "btd,bsd->bts"}> : () -> ()
    %cst_31 = arith.constant dense<0.000000e+00> : vector<1x8x8xf32>
    %103 = tpu.matmul %100, %101, %cst_31 {dimension_numbers = #tpu.dot_dimension_numbers<[2], [2], [1], [1], [0, 0, 0, 1, 1, 1], [0], [0]>} : vector<1x8x32xbf16>, vector<1x8x32xbf16>, vector<1x8x8xf32> -> vector<1x8x8xf32>
    "tpu.trace_stop"() : () -> ()
    %104 = vector.shape_cast %36 : vector<8x8xf32> to vector<1x8x8xf32>
    %105 = arith.addf %103, %104 : vector<1x8x8xf32>
    %cst_32 = arith.constant dense<0xFF800000> : vector<1x8xf32>
    %106 = vector.multi_reduction <maximumf>, %105, %cst_32 [2] : vector<1x8x8xf32> to vector<1x8xf32>
    %107 = vector.shape_cast %106 : vector<1x8xf32> to vector<1x8x1xf32>
    %108 = vector.broadcast %107 : vector<1x8x1xf32> to vector<1x8x8xf32>
    %109 = arith.subf %105, %108 : vector<1x8x8xf32>
    %110 = math.exp %109 : vector<1x8x8xf32>
    %cst_33 = arith.constant dense<0.000000e+00> : vector<1x8xf32>
    %111 = vector.multi_reduction <add>, %110, %cst_33 [2] : vector<1x8x8xf32> to vector<1x8xf32>
    %112 = vector.shape_cast %111 : vector<1x8xf32> to vector<1x8x1xf32>
    %113 = tpu.reciprocal %112 {approx = true} : vector<1x8x1xf32> -> vector<1x8x1xf32>
    %114 = vector.broadcast %113 : vector<1x8x1xf32> to vector<1x8x8xf32>
    %115 = arith.mulf %110, %114 : vector<1x8x8xf32>
    %116 = arith.truncf %115 : vector<1x8x8xf32> to vector<1x8x8xbf16>
    "tpu.trace_start"() <{level = 10 : i32, message = "bts,bsd->btd"}> : () -> ()
    %cst_34 = arith.constant dense<0.000000e+00> : vector<1x8x32xf32>
    %117 = tpu.matmul %116, %102, %cst_34 {dimension_numbers = #tpu.dot_dimension_numbers<[2], [1], [1], [2], [0, 0, 0, 1, 1, 2], [0], [0]>} : vector<1x8x8xbf16>, vector<1x8x32xbf16>, vector<1x8x32xf32> -> vector<1x8x32xf32>
    "tpu.trace_stop"() : () -> ()
    %118 = vector.shape_cast %117 : vector<1x8x32xf32> to vector<8x32xf32>
    %119 = arith.truncf %118 : vector<8x32xf32> to vector<8x32xbf16>
    %c0_35 = arith.constant 0 : index
    %c96 = arith.constant 96 : index
    %120 = vector.load %arg15[%c0_35, %c96] : memref<8x128xbf16, #tpu.memory_space<vmem>>, vector<8x32xbf16>
    tpu.vector_store %arg15[%c0_35, %c96], %119 {strides = array<i32>} : memref<8x128xbf16, #tpu.memory_space<vmem>>, vector<8x32xbf16>,
    %c0_36 = arith.constant 0 : index
    %c0_37 = arith.constant 0 : index
    %121 = vector.load %arg15[%c0_36, %c0_37] : memref<8x128xbf16, #tpu.memory_space<vmem>>, vector<8x128xbf16>
    %c0_38 = arith.constant 0 : index
    %c0_39 = arith.constant 0 : index
    %122 = vector.load %arg4[%c0_38, %c0_39] : memref<128x128xbf16, #tpu.memory_space<vmem>>, vector<128x128xbf16>
    %cst_40 = arith.constant dense<0.000000e+00> : vector<8x128xf32>
    %123 = tpu.matmul %121, %122, %cst_40 {dimension_numbers = #tpu.dot_dimension_numbers<[1], [0], [0], [1], [0, 0, 1, 1], [], []>} : vector<8x128xbf16>, vector<128x128xbf16>, vector<8x128xf32> -> vector<8x128xf32>
    %124 = arith.addf %1, %123 : vector<8x128xf32>
    %c0_41 = arith.constant 0 : index
    %c0_42 = arith.constant 0 : index
    %125 = vector.load %arg5[%c0_41, %c0_42] : memref<1x128xf32, #tpu.memory_space<vmem>>, vector<1x128xf32>
    %126 = vector.broadcast %125 : vector<1x128xf32> to vector<8x128xf32>
    %127 = arith.addf %124, %126 : vector<8x128xf32>
    %c0_43 = arith.constant 0 : index
    %c0_44 = arith.constant 0 : index
    %128 = vector.load %arg12[%c0_43, %c0_44] : memref<1x128xf32, #tpu.memory_space<vmem>>, vector<1x128xf32>
    %c0_45 = arith.constant 0 : index
    %c0_46 = arith.constant 0 : index
    %129 = vector.load %arg13[%c0_45, %c0_46] : memref<1x128xf32, #tpu.memory_space<vmem>>, vector<1x128xf32>
    %cst_47 = arith.constant dense<0.000000e+00> : vector<8xf32>
    %130 = vector.multi_reduction <add>, %127, %cst_47 [1] : vector<8x128xf32> to vector<8xf32>
    %131 = vector.shape_cast %130 : vector<8xf32> to vector<8x1xf32>
    %cst_48 = arith.constant 1.280000e+02 : f32
    %132 = vector.broadcast %cst_48 : f32 to vector<8x1xf32>
    %133 = arith.divf %131, %132 : vector<8x1xf32>
    %134 = vector.broadcast %133 : vector<8x1xf32> to vector<8x128xf32>
    %135 = arith.subf %127, %134 : vector<8x128xf32>
    %136 = arith.mulf %135, %135 : vector<8x128xf32>
    %cst_49 = arith.constant dense<0.000000e+00> : vector<8xf32>
    %137 = vector.multi_reduction <add>, %136, %cst_49 [1] : vector<8x128xf32> to vector<8xf32>
    %138 = vector.shape_cast %137 : vector<8xf32> to vector<8x1xf32>
    %cst_50 = arith.constant 1.280000e+02 : f32
    %139 = vector.broadcast %cst_50 : f32 to vector<8x1xf32>
    %140 = arith.divf %138, %139 : vector<8x1xf32>
    %141 = vector.broadcast %133 : vector<8x1xf32> to vector<8x128xf32>
    %142 = arith.subf %127, %141 : vector<8x128xf32>
    %cst_51 = arith.constant 9.99999974E-6 : f32
    %143 = vector.broadcast %cst_51 : f32 to vector<8x1xf32>
    %144 = arith.addf %140, %143 : vector<8x1xf32>
    %145 = math.rsqrt %144 : vector<8x1xf32>
    %146 = vector.broadcast %145 : vector<8x1xf32> to vector<8x128xf32>
    %147 = arith.mulf %142, %146 : vector<8x128xf32>
    %148 = vector.broadcast %128 : vector<1x128xf32> to vector<8x128xf32>
    %149 = arith.mulf %147, %148 : vector<8x128xf32>
    %150 = vector.broadcast %129 : vector<1x128xf32> to vector<8x128xf32>
    %151 = arith.addf %149, %150 : vector<8x128xf32>
    %152 = arith.truncf %151 : vector<8x128xf32> to vector<8x128xbf16>
    %c0_52 = arith.constant 0 : index
    %c0_53 = arith.constant 0 : index
    %153 = vector.load %arg6[%c0_52, %c0_53] : memref<128x512xbf16, #tpu.memory_space<vmem>>, vector<128x512xbf16>
    %cst_54 = arith.constant dense<0.000000e+00> : vector<8x512xf32>
    %154 = tpu.matmul %152, %153, %cst_54 {dimension_numbers = #tpu.dot_dimension_numbers<[1], [0], [0], [1], [0, 0, 1, 1], [], []>} : vector<8x128xbf16>, vector<128x512xbf16>, vector<8x512xf32> -> vector<8x512xf32>
    %c0_55 = arith.constant 0 : index
    %c0_56 = arith.constant 0 : index
    %155 = vector.load %arg7[%c0_55, %c0_56] : memref<1x512xf32, #tpu.memory_space<vmem>>, vector<1x512xf32>
    %156 = vector.broadcast %155 : vector<1x512xf32> to vector<8x512xf32>
    %157 = arith.addf %154, %156 : vector<8x512xf32>
    %cst_57 = arith.constant 0.000000e+00 : f32
    %158 = vector.broadcast %cst_57 : f32 to vector<8x512xf32>
    %159 = arith.maximumf %157, %158 : vector<8x512xf32>
    %160 = arith.truncf %159 : vector<8x512xf32> to vector<8x512xbf16>
    %c0_58 = arith.constant 0 : index
    %c0_59 = arith.constant 0 : index
    %161 = vector.load %arg8[%c0_58, %c0_59] : memref<512x128xbf16, #tpu.memory_space<vmem>>, vector<512x128xbf16>
    %cst_60 = arith.constant dense<0.000000e+00> : vector<8x128xf32>
    %162 = tpu.matmul %160, %161, %cst_60 {dimension_numbers = #tpu.dot_dimension_numbers<[1], [0], [0], [1], [0, 0, 1, 1], [], []>} : vector<8x512xbf16>, vector<512x128xbf16>, vector<8x128xf32> -> vector<8x128xf32>
    %c0_61 = arith.constant 0 : index
    %c0_62 = arith.constant 0 : index
    %163 = vector.load %arg9[%c0_61, %c0_62] : memref<1x128xf32, #tpu.memory_space<vmem>>, vector<1x128xf32>
    %164 = vector.broadcast %163 : vector<1x128xf32> to vector<8x128xf32>
    %165 = arith.addf %162, %164 : vector<8x128xf32>
    %166 = arith.addf %127, %165 : vector<8x128xf32>
    %167 = vector.shape_cast %166 : vector<8x128xf32> to vector<1x8x128xf32>
    %c0_63 = arith.constant 0 : index
    %c0_64 = arith.constant 0 : index
    %c0_65 = arith.constant 0 : index
    %168 = vector.load %arg14[%c0_63, %c0_64, %c0_65] : memref<1x8x128xf32, #tpu.memory_space<vmem>>, vector<1x8x128xf32>
    tpu.vector_store %arg14[%c0_63, %c0_64, %c0_65], %167 {strides = array<i32>} : memref<1x8x128xf32, #tpu.memory_space<vmem>>, vector<1x8x128xf32>,
    return
  }
  func.func @transform_0(%arg0: i32) -> (i32, i32, i32) {
    %c0_i32 = arith.constant 0 : i32
    %c0_i32_0 = arith.constant 0 : i32
    %c0_i32_1 = arith.constant 0 : i32
    return %arg0, %c0_i32, %c0_i32_0 : i32, i32, i32
  }
  func.func @transform_1(%arg0: i32) -> (i32, i32) {
    %c0_i32 = arith.constant 0 : i32
    %c0_i32_0 = arith.constant 0 : i32
    %c0_i32_1 = arith.constant 0 : i32
    return %c0_i32, %c0_i32_0 : i32, i32
  }
  func.func @transform_2(%arg0: i32) -> (i32, i32) {
    %c0_i32 = arith.constant 0 : i32
    %c0_i32_0 = arith.constant 0 : i32
    %c0_i32_1 = arith.constant 0 : i32
    return %c0_i32, %c0_i32_0 : i32, i32
  }
  func.func @transform_3(%arg0: i32) -> (i32, i32) {
    %c0_i32 = arith.constant 0 : i32
    %c0_i32_0 = arith.constant 0 : i32
    %c0_i32_1 = arith.constant 0 : i32
    return %c0_i32, %c0_i32_0 : i32, i32
  }
  func.func @transform_4(%arg0: i32) -> (i32, i32) {
    %c0_i32 = arith.constant 0 : i32
    %c0_i32_0 = arith.constant 0 : i32
    %c0_i32_1 = arith.constant 0 : i32
    return %c0_i32, %c0_i32_0 : i32, i32
  }
  func.func @transform_5(%arg0: i32) -> (i32, i32) {
    %c0_i32 = arith.constant 0 : i32
    %c0_i32_0 = arith.constant 0 : i32
    %c0_i32_1 = arith.constant 0 : i32
    return %c0_i32, %c0_i32_0 : i32, i32
  }
  func.func @transform_6(%arg0: i32) -> (i32, i32) {
    %c0_i32 = arith.constant 0 : i32
    %c0_i32_0 = arith.constant 0 : i32
    %c0_i32_1 = arith.constant 0 : i32
    return %c0_i32, %c0_i32_0 : i32, i32
  }
  func.func @transform_7(%arg0: i32) -> (i32, i32) {
    %c0_i32 = arith.constant 0 : i32
    %c0_i32_0 = arith.constant 0 : i32
    %c0_i32_1 = arith.constant 0 : i32
    return %c0_i32, %c0_i32_0 : i32, i32
  }
  func.func @transform_8(%arg0: i32) -> (i32, i32) {
    %c0_i32 = arith.constant 0 : i32
    %c0_i32_0 = arith.constant 0 : i32
    %c0_i32_1 = arith.constant 0 : i32
    return %c0_i32, %c0_i32_0 : i32, i32
  }
  func.func @transform_9(%arg0: i32) -> (i32, i32) {
    %c0_i32 = arith.constant 0 : i32
    %c0_i32_0 = arith.constant 0 : i32
    %c0_i32_1 = arith.constant 0 : i32
    return %c0_i32, %c0_i32_0 : i32, i32
  }
  func.func @transform_10(%arg0: i32) -> (i32, i32) {
    %c0_i32 = arith.constant 0 : i32
    %c0_i32_0 = arith.constant 0 : i32
    %c0_i32_1 = arith.constant 0 : i32
    return %c0_i32, %c0_i32_0 : i32, i32
  }
  func.func @transform_11(%arg0: i32) -> (i32, i32) {
    %c0_i32 = arith.constant 0 : i32
    %c0_i32_0 = arith.constant 0 : i32
    %c0_i32_1 = arith.constant 0 : i32
    return %c0_i32, %c0_i32_0 : i32, i32
  }
  func.func @transform_12(%arg0: i32) -> (i32, i32) {
    %c0_i32 = arith.constant 0 : i32
    %c0_i32_0 = arith.constant 0 : i32
    %c0_i32_1 = arith.constant 0 : i32
    return %c0_i32, %c0_i32_0 : i32, i32
  }
  func.func @transform_13(%arg0: i32) -> (i32, i32, i32) {
    %c0_i32 = arith.constant 0 : i32
    %c0_i32_0 = arith.constant 0 : i32
    %c0_i32_1 = arith.constant 0 : i32
    return %arg0, %c0_i32, %c0_i32_0 : i32, i32, i32
  }
}

</mosaic_0001>

<bundles_post_ra>
// kernel: tpu_custom_call.1
= control target key start
LH: loop header
LB: loop body
LE: loop exit
PB: predicated region body
PF: predicated region fallthrough
CT: control target
= control target key end

     0   :  { %s3513_s0 = inlined_call_operand.hbm [shape: f32[2,8,128], index: 0, kind: input, shape index: {}]   ;;  %s3514_s1 = inlined_call_operand.hbm [shape: f32[8,8], index: 1, kind: input, shape index: {}]   ;;  %s3515_s2 = inlined_call_operand.hbm [shape: bf16[128,384], index: 2, kind: input, shape index: {}]   ;;  %s3516_s3 = inlined_call_operand.hbm [shape: bf16[128,128], index: 3, kind: input, shape index: {}]   ;;  %s3517_s4 = inlined_call_operand.vmem [shape: f32[1,128], index: 4, kind: input, shape index: {}]   ;;  %s3518_s5 = inlined_call_operand.hbm [shape: bf16[128,512], index: 5, kind: input, shape index: {}]   ;;  %s3519_s6 = inlined_call_operand.vmem [shape: f32[1,512], index: 6, kind: input, shape index: {}]   ;;  %s3520_s7 = inlined_call_operand.hbm [shape: bf16[512,128], index: 7, kind: input, shape index: {}]   ;;  %s3521_s8 = inlined_call_operand.vmem [shape: f32[1,128], index: 8, kind: input, shape index: {}]   ;;  %s3522_s9 = inlined_call_operand.vmem [shape: f32[1,128], index: 9, kind: input, shape index: {}]   ;;  %s3523_s10 = inlined_call_operand.vmem [shape: f32[1,128], index: 10, kind: input, shape index: {}]   ;;  %s3524_s11 = inlined_call_operand.vmem [shape: f32[1,128], index: 11, kind: input, shape index: {}]   ;;  %s3525_s12 = inlined_call_operand.vmem [shape: f32[1,128], index: 12, kind: input, shape index: {}]   ;;  %s3526_s13 = inlined_call_operand.hbm [shape: f32[2,8,128], index: 13, kind: output, shape index: {}]  }
   0x1   :  { %3533 = sst [smem:[#allocation20_spill]] %s3514_s1 }
   0x2   :  { %3534 = sst [smem:[#allocation21_spill]] %s3516_s3 }
   0x3   :  { %3535 = sst [smem:[#allocation22_spill]] %s3519_s6 }
   0x4   :  { %3536 = sst [smem:[#allocation23_spill]] %s3521_s8 }
   0x5   :  { %3537 = sst [smem:[#allocation24_spill]] %s3526_s13 }
   0x6   :  { %18 = vsyncpa [#allocation4], 0 }
   0x7   :  { %20 = vsyncpa [#allocation4 + $0x1], 0 }
   0x8   :  { %21 = vsyncpa [#allocation7], 0 }
   0x9   :  { %22 = vsyncpa [#allocation10], 0 }
   0xa   :  { %23 = vsyncpa [#allocation13], 0 }
   0xb   :  { %24 = vsyncpa [#allocation5], 0 }
   0xc   :  { %26 = vsyncpa [#allocation5 + $0x1], 0  ;;  %s3088_s25 = smov 0   ;;  %s3090_s26 = smov 0  }
   0xd   :  { %s3092_s27 = smov 0   ;;  %s3094_s28 = smov 0  }
   0xe LB: > { %s2999_s29 = smov [#allocation6]   ;;  %s3109_s14 = sadd.s32 4294967295, %s2997_s28   ;;  %s2997_s28 = sphi %s3094_s28, %s3566_s28   ;;  %s2993_s27 = sphi %s3092_s27, %s3565_s27   ;;  %s2989_s26 = sphi %s3090_s26, %s3564_s26   ;;  %s2985_s25 = sphi %s3088_s25, %s3563_s25  }
   0xf   : > { %s354_s30 = sshll.u32 %s2999_s29, 4  ;;  %p2197_p0 = scmp.ge.s32.totalorder %s2997_s28, 1  ;;  %s355_s30 = int_to_ptr.vmem [resolvable:$true] %s354_s30 }
  0x10   : > { %p3528_p1 = scmp.eq.s32.totalorder %s3109_s14, 0  ;;  %p341_p2 = scmp.lt.s32.totalorder %s2997_s28, 3 }
  0x11   : > { %s3000_s16 = smov [#allocation9]   ;;  %s3001_s19 = smov [#allocation8]  }
  0x12   : > { %p3114_p3 = pnand %p2197_p0, %p341_p2  ;;  %s377_s17 = sshll.u32 %s3000_s16, 4  ;;  %s3121_s17 = int_to_ptr.vmem [resolvable:$true] %s377_s17 }
  0x13   : > { %s364_s20 = sshll.u32 %s3001_s19, 4  ;;  %s3540_s1 = sld [smem:[#allocation20_spill]]  ;;  %s3129_s20 = int_to_ptr.vmem [resolvable:$true] %s364_s20 }
  0x14   : > { %s3538_s15 = scalar_select %p3114_p3, 1, 0 }
  0x15   : > { %p2524_p5 = pneg %p3114_p3 }
  0x17   : > { %p3125_p6 = pnand %p2524_p5, %p3528_p1 }
  0x19   : > { %s2749_s23 = scalar_lea.hbm %s3540_s1, 128  ;;  %p3139_p8 = pneg %p3125_p6 }
  0x1a   : > { %p2750_p7 = scmp.ne.s32.totalorder %s3540_s1, %s2749_s23  ;;  %p2756_p11 = scmp.lt.u32.totalorder %s2749_s23, %s3540_s1 }
  0x1c   : > { %p2752_p9 = pnand %p3139_p8, %p2750_p7 }
  0x1e   : > { %p2753_p10 = pneg %p2752_p9 }
  0x20   : > { %p2758_p12 = pnand %p2756_p11, %p2753_p10 }
  0x22   : > { %2761 = shalt.err (!%p2758_p12)
}
  0x23   : > { %s2762_s21 = scalar_lea.vmem %s355_s30, 128  ;;  %p2770_p5 = scmp.lt.s32.totalorder %s355_s30, %s355_s30 }
  0x24   : > { %p2763_p13 = scmp.ne.s32.totalorder %s355_s30, %s2762_s21  ;;  %p2771_p4 = scmp.lt.s32.totalorder %s2762_s21, %s2762_s21 }
  0x26   : > { %p2765_p0 = pnand %p2763_p13, %p3139_p8  ;;  %p2772_p1 = por %p2771_p4, %p2770_p5 }
  0x28   : > { %p2766_p2 = pneg %p2765_p0 }
  0x2a   : > { %p2773_p3 = pnand %p2772_p1, %p2766_p2 }
  0x2c   : > { %2776 = shalt.err (!%p2773_p3)
}
  0x2d   : > { %2527 = dma.hbm_to_vmem [thread:$0]  (!%p3125_p6), %s3540_s1, 128, %s355_s30, [#allocation7]  }
  0x2e   : > { %s3542_s3 = sld [smem:[#allocation21_spill]] }
  0x34   : > { %s2777_s29 = scalar_lea.hbm %s3542_s3, 1024 }
  0x35   : > { %p2778_p7 = scmp.ne.s32.totalorder %s3542_s3, %s2777_s29  ;;  %p2784_p1 = scmp.lt.u32.totalorder %s2777_s29, %s3542_s3 }
  0x37   : > { %p2780_p9 = pnand %p2778_p7, %p3139_p8 }
  0x39   : > { %p2781_p4 = pneg %p2780_p9 }
  0x3b   : > { %p2786_p3 = pnand %p2784_p1, %p2781_p4 }
  0x3d   : > { %2789 = shalt.err (!%p2786_p3)
}
  0x3e   : > { %s2790_s30 = scalar_lea.vmem %s3121_s17, 1024  ;;  %p2798_p13 = scmp.lt.s32.totalorder %s3121_s17, %s3121_s17 }
  0x3f   : > { %p2791_p10 = scmp.ne.s32.totalorder %s3121_s17, %s2790_s30  ;;  %p2799_p0 = scmp.lt.s32.totalorder %s2790_s30, %s2790_s30 }
  0x41   : > { %p2793_p11 = pnand %p2791_p10, %p3139_p8  ;;  %p2800_p2 = por %p2799_p0, %p2798_p13 }
  0x43   : > { %p2794_p12 = pneg %p2793_p11 }
  0x45   : > { %p2801_p5 = pnand %p2800_p2, %p2794_p12 }
  0x47   : > { %2804 = shalt.err (!%p2801_p5)
}
  0x48   : > { %s3530_s8 = smov 64   ;;  %s3531_s6 = smov 4  }
  0x49   : > { %2533 = dma.hbm_to_vmem [thread:$0]  (!%p3125_p6), %s3542_s3, 1024, %s3121_s17, [#allocation10], %s3530_s8, %s3530_s8, %s3531_s6  }
  0x4a   : > { %s2805_s29 = scalar_lea.hbm %s3515_s2, 3072 }
  0x4b   : > { %p2806_p7 = scmp.ne.s32.totalorder %s3515_s2, %s2805_s29  ;;  %p2812_p1 = scmp.lt.u32.totalorder %s2805_s29, %s3515_s2 }
  0x4d   : > { %p2808_p9 = pnand %p2806_p7, %p3139_p8 }
  0x4f   : > { %p2809_p4 = pneg %p2808_p9 }
  0x51   : > { %p2814_p3 = pnand %p2812_p1, %p2809_p4 }
  0x53   : > { %2817 = shalt.err (!%p2814_p3)
}
  0x54   : > { %s2818_s17 = scalar_lea.vmem %s3129_s20, 3072  ;;  %p2826_p13 = scmp.lt.s32.totalorder %s3129_s20, %s3129_s20 }
  0x55   : > { %p2819_p10 = scmp.ne.s32.totalorder %s3129_s20, %s2818_s17  ;;  %p2827_p0 = scmp.lt.s32.totalorder %s2818_s17, %s2818_s17 }
  0x57   : > { %p2821_p11 = pnand %p2819_p10, %p3139_p8  ;;  %p2828_p2 = por %p2827_p0, %p2826_p13 }
  0x59   : > { %p2822_p12 = pneg %p2821_p11 }
  0x5b   : > { %p2829_p5 = pnand %p2828_p2, %p2822_p12 }
  0x5d   : > { %2832 = shalt.err (!%p2829_p5)
}
  0x5e   : > { %s3004_s22 = smov 192   ;;  %s3005_s1 = smov 12  }
  0x5f   : > { %2530 = dma.hbm_to_vmem [thread:$0]  (!%p3125_p6), %s3515_s2, 3072, %s3129_s20, [#allocation7], %s3004_s22, %s3004_s22, %s3005_s1  }
  0x60   : > { %s3006_s23 = smov [#allocation11]   ;;  %s2833_s30 = scalar_lea.hbm %s3518_s5, 4096 }
  0x61   : > { %s393_s29 = sshll.u32 %s3006_s23, 4  ;;  %p2834_p7 = scmp.ne.s32.totalorder %s3518_s5, %s2833_s30  ;;  %s394_s29 = int_to_ptr.vmem [resolvable:$true] %s393_s29 }
  0x62   : > { %p2840_p1 = scmp.lt.u32.totalorder %s2833_s30, %s3518_s5 }
  0x63   : > { %p2836_p9 = pnand %p2834_p7, %p3139_p8 }
  0x65   : > { %p2837_p4 = pneg %p2836_p9 }
  0x67   : > { %p2842_p3 = pnand %p2840_p1, %p2837_p4 }
  0x69   : > { %2845 = shalt.err (!%p2842_p3)
}
  0x6a   : > { %s2846_s20 = scalar_lea.vmem %s394_s29, 4096  ;;  %p2854_p13 = scmp.lt.s32.totalorder %s394_s29, %s394_s29 }
  0x6b   : > { %p2847_p10 = scmp.ne.s32.totalorder %s394_s29, %s2846_s20  ;;  %p2855_p0 = scmp.lt.s32.totalorder %s2846_s20, %s2846_s20 }
  0x6d   : > { %p2849_p11 = pnand %p2847_p10, %p3139_p8  ;;  %p2856_p2 = por %p2855_p0, %p2854_p13 }
  0x6f   : > { %p2850_p12 = pneg %p2849_p11 }
  0x71   : > { %p2857_p5 = pnand %p2856_p2, %p2850_p12 }
  0x73   : > { %2860 = shalt.err (!%p2857_p5)
}
  0x74   : > { %s3007_s8 = smov 256   ;;  %s3008_s22 = smov 16  }
  0x75   : > { %2536 = dma.hbm_to_vmem [thread:$0]  (!%p3125_p6), %s3518_s5, 4096, %s394_s29, [#allocation10], %s3007_s8, %s3007_s8, %s3008_s22  }
  0x76   : > { %s3009_s1 = smov [#allocation12]   ;;  %s2861_s19 = scalar_lea.hbm %s3520_s7, 4096 }
  0x77   : > { %s409_s24 = sshll.u32 %s3009_s1, 4  ;;  %p2862_p7 = scmp.ne.s32.totalorder %s3520_s7, %s2861_s19  ;;  %s410_s24 = int_to_ptr.vmem [resolvable:$true] %s409_s24 }
  0x78   : > { %p2868_p1 = scmp.lt.u32.totalorder %s2861_s19, %s3520_s7 }
  0x79   : > { %p2864_p9 = pnand %p2862_p7, %p3139_p8 }
  0x7b   : > { %p2865_p4 = pneg %p2864_p9 }
  0x7d   : > { %p2870_p3 = pnand %p2868_p1, %p2865_p4 }
  0x7f   : > { %2873 = shalt.err (!%p2870_p3)
}
  0x80   : > { %s2874_s29 = scalar_lea.vmem %s410_s24, 4096  ;;  %p2882_p13 = scmp.lt.s32.totalorder %s410_s24, %s410_s24 }
  0x81   : > { %p2875_p10 = scmp.ne.s32.totalorder %s410_s24, %s2874_s29  ;;  %p2883_p0 = scmp.lt.s32.totalorder %s2874_s29, %s2874_s29 }
  0x83   : > { %p2877_p11 = pnand %p2875_p10, %p3139_p8  ;;  %p2884_p2 = por %p2883_p0, %p2882_p13 }
  0x85   : > { %p2878_p12 = pneg %p2877_p11 }
  0x87   : > { %p2885_p5 = pnand %p2884_p2, %p2878_p12 }
  0x89   : > { %2888 = shalt.err (!%p2885_p5)
}
  0x8a   : > { %s3543_s8 = smov 4   ;;  %s3544_s22 = smov 64  }
  0x8b   : > { %2539 = dma.hbm_to_vmem [thread:$0]  (!%p3125_p6), %s3520_s7, 4096, %s410_s24, [#allocation13], %s3544_s22, %s3544_s22, %s3543_s8  }
  0x8c   : > { %s2196_s18 = sadd.s32 4294967294, %s2997_s28   ;;  %s3245_s16 = sadd.s32 1, %s2997_s28  }
  0x8d   : > { %s39_s1 = sadd.s32 1, %s2993_s27  ;;  %s36_s13 = ssub.s32 %s2997_s28, %s3245_s16 }
  0x8e   : > { %p46_p8 = scmp.ne.s32.totalorder %s2993_s27, %s2989_s26  ;;  %p37_p7 = scmp.eq.s32.totalorder %s36_s13, 0 }
  0x8f   : > { %p47_p9 = scmp.eq.s32.totalorder %s2997_s28, 0  ;;  %p52_p4 = scmp.ne.s32.totalorder %s2989_s26, %s2985_s25 }
  0x90   : > { %p328_p1 = scmp.eq.s32.totalorder %s3109_s14, 1  ;;  %p3545_p10 = scmp.eq.s32.totalorder %s3109_s14, 0 }
  0x91   : > { %s3257_s23 = scalar_select %p37_p7, %s2993_s27, %s39_s1  }
  0x92   : > { %p48_p3 = por %p47_p9, %p46_p8  ;;  %p3261_p11 = por %p3545_p10, %p52_p4 }
  0x93   : > { %p3265_p6 = por %p328_p1, %p46_p8  ;;  %p334_p12 = scmp.eq.s32.totalorder %s2196_s18, 1 }
  0x94   : > { %p2553_p13 = scmp.lt.s32.totalorder %s2997_s28, 2  ;;  %s438_s21 = sand.u32 1, %s2993_s27  }
  0x95   : > { %s3547_s24 = scalar_select %p3265_p6, 1, 0 }
  0x96   : > { %p3271_p0 = por %p334_p12, %p52_p4  ;;  %s2204_s17 = sshll.u32 %s438_s21, 3 }
  0x97   : > { %s2205_s20 = sshll.u32 %s2997_s28, 7  ;;  %s442_s3 = scalar_lea.vmem [#allocation3], %s2204_s17 }
  0x98   : > { %s3548_s30 = scalar_select %p3271_p0, 1, 0 }
  0x99   : > { %s3279_s22 = scalar_lea.hbm %s3513_s0, %s2205_s20  ;;  %s449_s6 = sshll.u32 %s442_s3, 4  ;;  %s3285_s6 = int_to_ptr.vmem [resolvable:$true] %s449_s6 }
  0x9a   : > { %p3281_p2 = pnand %p2553_p13, %p48_p3  ;;  %s439_s1 = scalar_lea.sflag [#allocation4], %s438_s21 }
  0x9b   : > { %s2889_s13 = scalar_lea.hbm %s3279_s22, 128  ;;  %s2894_s29 = scalar_lea.hbm %s3513_s0, 256 }
  0x9c   : > { %p2890_p5 = scmp.ne.s32.totalorder %s3279_s22, %s2889_s13  ;;  %p2891_p8 = pneg %p3281_p2 }
  0x9d   : > { %p2895_p4 = scmp.lt.u32.totalorder %s3279_s22, %s3513_s0  ;;  %p2896_p1 = scmp.lt.u32.totalorder %s2894_s29, %s2889_s13 }
  0x9e   : > { %p2892_p7 = pnand %p2891_p8, %p2890_p5  ;;  %p2898_p10 = scmp.lt.u32.totalorder %s2889_s13, %s3279_s22 }
  0x9f   : > { %p2897_p3 = por %p2896_p1, %p2895_p4 }
  0xa0   : > { %p2893_p9 = pneg %p2892_p7 }
  0xa1   : > { %p2899_p12 = por %p2898_p10, %p2897_p3 }
  0xa3   : > { %p2900_p13 = pnand %p2899_p12, %p2893_p9 }
  0xa5   : > { %2903 = shalt.err (!%p2900_p13)
}
  0xa6   : > { %s2904_s21 = scalar_lea.vmem %s3285_s6, 128  ;;  %s3010_s20 = smov [#allocation3]  }
  0xa7   : > { %p2905_p5 = scmp.ne.s32.totalorder %s3285_s6, %s2904_s21  ;;  %s2909_s17 = sshll.u32 %s3010_s20, 4  ;;  %s2910_s17 = int_to_ptr.vmem [resolvable:$false] %s2909_s17 }
  0xa8   : > { %s2911_s8 = scalar_lea.vmem %s2910_s17, 256  ;;  %p2912_p6 = scmp.lt.s32.totalorder %s3285_s6, %s2910_s17 }
  0xa9   : > { %p2907_p7 = pnand %p2905_p5, %p2891_p8  ;;  %p2913_p4 = scmp.lt.s32.totalorder %s2911_s8, %s2904_s21 }
  0xab   : > { %p2908_p0 = pneg %p2907_p7  ;;  %p2914_p1 = por %p2913_p4, %p2912_p6 }
  0xad   : > { %p2915_p3 = pnand %p2914_p1, %p2908_p0 }
  0xaf   : > { %2918 = shalt.err (!%p2915_p3)
}
  0xb0   : > { %2543 = dma.hbm_to_vmem [thread:$0]  (!%p3281_p2), %s3279_s22, 128, %s3285_s6, %s439_s1  }
  0xb1   : > { %p3550_p9 = scmp.ne.s32.totalorder %s3538_s15, 0 }
  0xb2   : > { %s3315_s13 = sand.u32 (!%p3550_p9), 1, %s2989_s26  }
  0xb3   : > { %458 = sbr.rel (%p3550_p9) target bundleno = 3139 (0xc43), region = 72  ;;  %s2207_s29 = sshll.u32 (!%p3550_p9), %s3315_s13, 3 }
  0xb4   : > { %s461_s3 = scalar_lea.sflag (!%p3550_p9), [#allocation4], %s3315_s13  ;;  %s464_s21 = scalar_lea.vmem (!%p3550_p9), [#allocation3], %s2207_s29 }
  0xba   : > { %2964 = dma.done.wait (%p3261_p11), %s461_s3, 128  }
  0xbb   : > { %2966 = vsyncadd (%p3261_p11), %s461_s3, 4294967168  ;;  %p3551_p6 = scmp.eq.s32.totalorder %s3109_s14, 0 }
  0xbd   : > { %2968 = dma.done.wait (%p3551_p6), [#allocation7], 3200   ;;  %p3552_p0 = pmov %p3551_p6 }
  0xbf   : > { %2970 = vsyncadd (%p3552_p0), [#allocation7], 4294964096  ;;  %p3553_p2 = pmov %p3552_p0 }
  0xc0   : > { %p3554_p8 = pmov %p3552_p0 }
  0xc1   : > { %2972 = dma.done.wait (%p3553_p2), [#allocation10], 5120  }
  0xc2   : > { %2974 = vsyncadd (%p3554_p8), [#allocation10], 4294962176  ;;  %p3555_p10 = pmov %p3552_p0 }
  0xc3   : > { %p3556_p12 = pmov %p3552_p0 }
  0xc4   : > { %2976 = dma.done.wait (%p3555_p10), [#allocation13], 4096  }
  0xc5   : > { %2978 = vsyncadd (%p3556_p12), [#allocation13], 4294963200  ;;  %v3337_v0 = vld [vmem:[%s464_s21] sm:$0xff]  ;;  %v3011_v3 = vmov 0.0   ;;  %v2615_v6 = vld [vmem:[#allocation8 + $0x18] ss:$12 sps:$4 sm:$0xff]  }
  0xc6   : > { %531 = vadd.xlane.f32.xlu0 %v3337_v0  ;;  %v2609_v1 = vld [vmem:[#allocation8 + $0x4] ss:$12 sps:$4 sm:$0xff]   ;;  %v2611_v2 = vld [vmem:[#allocation8] ss:$12 sps:$4 sm:$0xff]   ;;  %2412 = vmatprep.subr.bf16.mxu1 %v3011_v3  ;;  %v2612_v4 = vld [vmem:[#allocation8 + $0x8] ss:$12 sps:$4 sm:$0xff]  }
  0xc7   : > { %v2613_v5 = vld [vmem:[#allocation8 + $0x1c] ss:$12 sps:$4 sm:$0xff]   ;;  %718 = vmatprep.subr.bf16.mxu0 %v2609_v1  ;;  %v2616_v7 = vld [vmem:[#allocation8 + $0x20] ss:$12 sps:$4 sm:$0xff]   ;;  %2413 = vmatpush3.bf16.msra.mxu1 %v2612_v4  ;;  %v2620_v14 = vld [vmem:[#allocation8 + $0x38] ss:$12 sps:$4 sm:$0xff]  }
  0xc8   : > { %v2617_v8 = vld [vmem:[#allocation8 + $0x34] ss:$12 sps:$4 sm:$0xff]   ;;  %719 = vmatpush1.bf16.msra.mxu0 %v2611_v2  ;;  %2414 = vmatprep.subr.bf16.mxu1 %v3011_v3  ;;  %v2619_v13 = vld [vmem:[#allocation8 + $0x30] ss:$12 sps:$4 sm:$0xff]   ;;  %v2621_v15 = vld [vmem:[#allocation8 + $0x4c] ss:$12 sps:$4 sm:$0xff]  }
  0xc9   : > { %720 = vmatprep.subr.bf16.mxu0 %v2613_v5  ;;  %v2623_v16 = vld [vmem:[#allocation8 + $0x48] ss:$12 sps:$4 sm:$0xff]   ;;  %v2624_v17 = vld [vmem:[#allocation8 + $0x50] ss:$12 sps:$4 sm:$0xff]   ;;  %v2627_v19 = vld [vmem:[#allocation8 + $0x60] ss:$12 sps:$4 sm:$0xff]  }
  0xca   : > { %v2625_v18 = vld [vmem:[#allocation8 + $0x64] ss:$12 sps:$4 sm:$0xff]   ;;  %v2628_v20 = vld [vmem:[#allocation8 + $0x68] ss:$12 sps:$4 sm:$0xff]   ;;  %v2632_v23 = vld [vmem:[#allocation8 + $0x80] ss:$12 sps:$4 sm:$0xff]  }
  0xcb   : > { %2415 = vmatpush3.bf16.msra.mxu1 %v2616_v7  ;;  %v2629_v21 = vld [vmem:[#allocation8 + $0x7c] ss:$12 sps:$4 sm:$0xff]   ;;  %v2631_v22 = vld [vmem:[#allocation8 + $0x78] ss:$12 sps:$4 sm:$0xff]   ;;  %v2633_v24 = vld [vmem:[#allocation8 + $0x94] ss:$12 sps:$4 sm:$0xff]  }
  0xcc   : > { %721 = vmatpush1.bf16.msra.mxu0 %v2615_v6  ;;  %2416 = vmatprep.subr.bf16.mxu1 %v3011_v3  ;;  %v3012_v25 = vmov 0   ;;  %vm3013_vm0 = vmmov 0   ;;  %v2635_v26 = vld [vmem:[#allocation8 + $0x90] ss:$12 sps:$4 sm:$0xff]   ;;  %v2636_v27 = vld [vmem:[#allocation8 + $0x98] ss:$12 sps:$4 sm:$0xff]  }
  0xcd   : > { %722 = vmatprep.subr.bf16.mxu0 %v2617_v8  ;;  %750 = vmatprep.mubr.bf16.mxu0 %v3012_v25  ;;  %v2637_v28 = vld [vmem:[#allocation8 + $0xac] ss:$12 sps:$4 sm:$0xff]   ;;  %v2639_v29 = vld [vmem:[#allocation8 + $0xa8] ss:$12 sps:$4 sm:$0xff]   ;;  %v2640_v30 = vld [vmem:[#allocation8 + $0xb0] ss:$12 sps:$4 sm:$0xff]  }
  0xce   : > { %2428 = vmatprep.mubr.msk.bf16.mxu1 %vm3013_vm0, %v3011_v3  ;;  %v2214_v35 = vld [vmem:[%s3522_s9] ss:$0 sm:$0xff]  ;;  %vm803_vm1 = vcmask 261120   ;;  %s3014_s18 = smov 96   ;;  %s3015_s1 = smov 32   ;;  %vm866_vm2 = vcmask 1043456  }
  0xcf   : > { %2417 = vmatpush3.bf16.msra.mxu1 %v2620_v14  ;;  %v2215_v37 = vld [vmem:[%s3523_s10] ss:$0 sm:$0xff]  ;;  %v3376_v54 = vld [vmem:[#allocation6] sm:$0xff]  ;;  %vm850_vm3 = vcmask 64512   ;;  %s3016_s20 = smov 64   ;;  %vm911_vm4 = vcmask 257024  }
  0xd0   : > { %723 = vmatpush1.bf16.msra.mxu0 %v2619_v13  ;;  %2418 = vmatprep.subr.bf16.mxu1 %v3011_v3  ;;  %vm1033_vm5 = vcmask 519424   ;;  %vm1152_vm6 = vcmask 781824   ;;  %vm1271_vm7 = vcmask 1044224   ;;  %s3558_s17 = sld [smem:[#allocation23_spill]]  ;;  %s2328_s8 = sshll.u32 %s3109_s14, 7 }
  0xd1   : > { %724 = vmatprep.subr.bf16.mxu0 %v2621_v15  ;;  %s526_s3 = scalar_lea.vmem [#allocation14], %s2207_s29  ;;  %s3559_s22 = sld [smem:[#allocation24_spill]] }
  0xd2   : > { %s2078_s21 = sshll.u32 %s526_s3, 4  ;;  %p3560_p13 = scmp.ne.s32.totalorder %s3547_s24, 0  ;;  %s3471_s21 = int_to_ptr.vmem [resolvable:$true] %s2078_s21 }
  0xd3   : > { %2419 = vmatpush3.bf16.msra.mxu1 %v2624_v17  ;;  %s3017_s14 = smov [#allocation14]  }
  0xd4   : > { %725 = vmatpush1.bf16.msra.mxu0 %v2623_v16  ;;  %2420 = vmatprep.subr.bf16.mxu1 %v3011_v3  ;;  %s2923_s29 = sshll.u32 %s3017_s14, 4  ;;  %s2924_s29 = int_to_ptr.vmem [resolvable:$false] %s2923_s29 }
  0xd5   : > { %726 = vmatprep.subr.bf16.mxu0 %v2625_v18  ;;  %p2926_p4 = scmp.lt.s32.totalorder %s3471_s21, %s2924_s29 }
  0xd7   : > { %2421 = vmatpush3.bf16.msra.mxu1 %v2628_v20  ;;  %s3469_s6 = scalar_lea.hbm %s3559_s22, %s2328_s8 }
  0xd8   : > { %727 = vmatpush1.bf16.msra.mxu0 %v2627_v19  ;;  %2422 = vmatprep.subr.bf16.mxu1 %v3011_v3 }
  0xd9   : > { %728 = vmatprep.subr.bf16.mxu0 %v2629_v21 }
  0xdb   : > { %2423 = vmatpush3.bf16.msra.mxu1 %v2632_v23 }
  0xdc   : > { %729 = vmatpush1.bf16.msra.mxu0 %v2631_v22  ;;  %2424 = vmatprep.subr.bf16.mxu1 %v3011_v3 }
  0xdd   : > { %730 = vmatprep.subr.bf16.mxu0 %v2633_v24 }
  0xdf   : > { %2425 = vmatpush3.bf16.msra.mxu1 %v2636_v27 }
  0xe0   : > { %731 = vmatpush1.bf16.msra.mxu0 %v2635_v26  ;;  %2426 = vmatprep.subr.bf16.mxu1 %v3011_v3 }
  0xe1   : > { %732 = vmatprep.subr.bf16.mxu0 %v2637_v28 }
  0xe3   : > { %2427 = vmatpush3.bf16.msra.mxu1 %v2640_v30 }
  0xe4   : > { %733 = vmatpush1.bf16.msra.mxu0 %v2639_v29  ;;  %2432 = vmatprep.subr.bf16.mxu1 %v3011_v3 }
  0xe5   : > { %2456 = vmatprep.subr.bf16.mxu0 %v3011_v3 }
 0x153   : > { %v532_v9 = vpop.xlane.xlu0 %531 }
 0x154   : > { %v534_v10 = vmul.f32 0.0078125, %v532_v9 }
 0x156   : > { %v535_v11 = vsub.f32 %v3337_v0, %v534_v10 }
 0x158   : > { %v536_v12 = vmul.f32 %v535_v11, %v535_v11 }
 0x15a   : > { %537 = vadd.xlane.f32.xlu0 %v536_v12 }
 0x1e7   : > { %v538_v31 = vpop.xlane.xlu0 %537 }
 0x1e8   : > { %v539_v32 = vmul.f32 0.0078125, %v538_v31 }
 0x1ea   : > { %v540_v33 = vadd.f32 1e-05, %v539_v32 }
 0x1ec   : > { %2729 = vrsqrt.f32 %v540_v33 }
 0x1f6   : > { %v2730_v34 = vpop.eup %2729 }
 0x1f7   : > { %v542_v36 = vmul.f32 %v2730_v34, %v535_v11 }
 0x1f9   : > { %v549_v38 = vmul.f32 %v2214_v35, %v542_v36 }
 0x1fb   : > { %v556_v39 = vadd.f32 %v2215_v37, %v549_v38 }
 0x1fd   : > { %v557_v40 = vpack.c.bf16 %v556_v39, %v556_v39 }
 0x1ff   : > { %751 = vmatmul.mubr.bf16.vlgmr.msra.gmra.mrb[0].mxu0 %v557_v40  ;;  %2429 = vmatmul.mubr.bf16.vlgmr.msra.gmra.mrb[0].mxu1 %v557_v40 }
 0x200   : > { %2434 = vmatprep.mubr.msk.bf16.mxu1 %vm3013_vm0, %v3011_v3  ;;  %2458 = vmatprep.mubr.msk.bf16.mxu0 %vm3013_vm0, %v3011_v3 }
 0x2d2   : > { %v752_v41 = vpop.f32.mrb[0].mxu0  ;;  %v793_v42 = vpop.f32.mrb[0].mxu1 }
 0x2d3   : > { %v754_v43 = vpop.f32.mrb[1].mxu0  ;;  %v2430_v44 = vpop.f32.mrb[1].mxu1  ;;  %v3367_v51 = vpack.c.bf16 %v793_v42, %v793_v42  ;;  %v799_v52 = vpack.c.bf16 %v752_v41, %v752_v41 }
 0x2d4   : > { %v800_v45 = vpack.c.bf16 %v754_v43, %v754_v43  ;;  %v756_v46 = vpop.f32.mrb[2].mxu0  ;;  %v796_v47 = vpop.f32.mrb[2].mxu1 }
 0x2d5   : > { %v757_v48 = vpop.f32.mrb[3].mxu0  ;;  %v2431_v49 = vpop.f32.mrb[3].mxu1  ;;  %v868_v53 = vsel %vm866_vm2, %v3367_v51, 0 }
 0x2d6   : > { %917 = vrot.lane.b32.xlu0 %v800_v45, %s3014_s18  ;;  %v808_v50 = vsel %vm803_vm1, %v800_v45, 0 }
 0x2d7   : > { %2433 = vmatpush3.bf16.xpose.msra.mxu1 %v808_v50 }
 0x2d8   : > { %2438 = vmatprep.subr.bf16.mxu1 %v3011_v3 }
 0x2da   : > { %1156 = vrot.lane.b32.xlu0 %v800_v45, %s3015_s1 }
 0x2de   : > { %2435 = vmatmul.mubr.msk.bf16.vlgmr.msra.gmra.mrb[4].mxu1 %vm803_vm1, %v799_v52 }
 0x2df   : > { %2439 = vmatpush3.bf16.msra.mxu1 %v868_v53  ;;  %2440 = vmatprep.mubr.msk.bf16.mxu1 %vm3013_vm0, %v3011_v3 }
 0x2e0   : > { %2444 = vmatprep.subr.bf16.mxu1 %v3011_v3 }
 0x348   : > { %v918_v6 = vpop.permute.xlu0 %917 }
 0x349   : > { %v923_v13 = vsel %vm803_vm1, %v918_v6, 0 }
 0x34c   : > { %v1157_v11 = vpop.permute.xlu0 %1156 }
 0x34d   : > { %v1162_v15 = vsel %vm803_vm1, %v1157_v11, 0 }
 0x3b1   : > { %v844_v55 = vpop.f32.mrb[4].mxu1 }
 0x3b2   : > { %v845_v56 = vadd.f32 %v844_v55, %v3376_v54  ;;  %v2436_v57 = vpop.f32.mrb[5].mxu1 }
 0x3b3   : > { %v847_v58 = vpop.f32.mrb[6].mxu1 }
 0x3b4   : > { %v2437_v59 = vpop.f32.mrb[7].mxu1  ;;  %v851_v60 = vsel %vm850_vm3, %v845_v56, -inf }
 0x3b5   : > { %852 = vmax.xlane.f32.xlu1 %v851_v60 }
 0x442   : > { %v853_v61 = vpop.xlane.xlu1 %852 }
 0x443   : > { %v854_v62 = vsub.f32 %v845_v56, %v853_v61 }
 0x445   : > { %v855_v63 = vmul.f32 1.442695, %v854_v62 }
 0x447   : > { %2731 = vpow2.f32 %v855_v63 }
 0x451   : > { %v2732_v1 = vpop.eup %2731 }
 0x452   : > { %v857_v2 = vsel %vm850_vm3, %v2732_v1, 0.0 }
 0x453   : > { %858 = vadd.xlane.f32.xlu1 %v857_v2 }
 0x464   : > { %914 = vrot.lane.b32.xlu1 %v799_v52, %s3014_s18 }
 0x468   : > { %1037 = vrot.lane.b32.xlu1 %v800_v45, %s3016_s20 }
 0x46c   : > { %1035 = vrot.lane.b32.xlu1 %v799_v52, %s3016_s20 }
 0x470   : > { %1154 = vrot.lane.b32.xlu1 %v799_v52, %s3015_s1 }
 0x4e0   : > { %v859_v4 = vpop.xlane.xlu1 %858 }
 0x4e1   : > { %2733 = vrcp.f32 %v859_v4 }
 0x4e4   : > { %v915_v5 = vpop.permute.xlu1 %914 }
 0x4e8   : > { %v1038_v7 = vpop.permute.xlu1 %1037 }
 0x4e9   : > { %v1043_v8 = vsel %vm803_vm1, %v1038_v7, 0 }
 0x4ea   : > { %2457 = vmatpush3.bf16.xpose.msra.mxu0 %v1043_v8 }
 0x4eb   : > { %v2734_v9 = vpop.eup %2733  ;;  %2468 = vmatprep.subr.bf16.mxu0 %v3011_v3 }
 0x4ec   : > { %v861_v10 = vmul.f32 %v2734_v9, %v2732_v1  ;;  %v1036_v14 = vpop.permute.xlu1 %1035 }
 0x4ee   : > { %v862_v12 = vpack.c.bf16 %v861_v10, %v861_v10 }
 0x4f0   : > { %2441 = vmatmul.mubr.msk.bf16.vlgmr.msra.gmra.mrb[8].mxu1 %vm850_vm3, %v862_v12  ;;  %v1155_v16 = vpop.permute.xlu1 %1154  ;;  %v2641_v12 = vld [vmem:[#allocation9] sm:$0xff]  }
 0x4f1   : > { %2445 = vmatpush3.bf16.xpose.msra.mxu1 %v923_v13  ;;  %2459 = vmatmul.mubr.msk.bf16.vlgmr.msra.gmra.mrb[4].mxu0 %vm803_vm1, %v1036_v14  ;;  %v2642_v13 = vld [vmem:[#allocation9 + $0x8] sm:$0xff]   ;;  %v2643_v14 = vld [vmem:[#allocation9 + $0x10] sm:$0xff]  }
 0x4f2   : > { %2469 = vmatpush3.bf16.xpose.msra.mxu0 %v1162_v15  ;;  %2446 = vmatprep.mubr.msk.bf16.mxu1 %vm3013_vm0, %v3011_v3  ;;  %v2644_v15 = vld [vmem:[#allocation9 + $0x18] sm:$0xff]  }
 0x4f3   : > { %2470 = vmatprep.mubr.msk.bf16.mxu0 %vm3013_vm0, %v3011_v3  ;;  %2450 = vmatprep.subr.bf16.mxu1 %v3011_v3 }
 0x4f4   : > { %2480 = vmatprep.subr.bf16.mxu0 %v3011_v3 }
 0x4f8   : > { %2447 = vmatmul.mubr.msk.bf16.vlgmr.msra.gmra.mrb[12].mxu1 %vm803_vm1, %v915_v5 }
 0x4f9   : > { %2471 = vmatmul.mubr.msk.bf16.vlgmr.msra.gmra.mrb[8].mxu0 %vm803_vm1, %v1155_v16  ;;  %2452 = vmatprep.mubr.msk.bf16.mxu1 %vm3013_vm0, %v3011_v3  ;;  %v2645_v16 = vld [vmem:[#allocation9 + $0x20] sm:$0xff]  }
 0x4fa   : > { %2496 = vmatprep.mubr.msk.bf16.mxu0 %vm3013_vm0, %v3011_v3  ;;  %2481 = vmatpush3.bf16.msra.mxu0 %v2641_v12  ;;  %v2685_v12 = vld [vmem:[#allocation11 + $0xc0] ss:$16 sps:$4 sm:$0xff]  }
 0x4fb   : > { %2482 = vmatprep.subr.bf16.mxu0 %v3011_v3 }
 0x4fe   : > { %2483 = vmatpush3.bf16.msra.mxu0 %v2642_v13  ;;  %v2688_v13 = vld [vmem:[#allocation11 + $0xc8] ss:$16 sps:$4 sm:$0xff]  }
 0x4ff   : > { %2484 = vmatprep.subr.bf16.mxu0 %v3011_v3 }
 0x502   : > { %2485 = vmatpush3.bf16.msra.mxu0 %v2643_v14  ;;  %v2693_v14 = vld [vmem:[#allocation11 + $0xe4] ss:$16 sps:$4 sm:$0xff]  }
 0x503   : > { %2486 = vmatprep.subr.bf16.mxu0 %v3011_v3 }
 0x506   : > { %2487 = vmatpush3.bf16.msra.mxu0 %v2644_v15  ;;  %v2696_v15 = vld [vmem:[#allocation11 + $0xec] ss:$16 sps:$4 sm:$0xff]  }
 0x507   : > { %2488 = vmatprep.subr.bf16.mxu0 %v3011_v3 }
 0x50a   : > { %2489 = vmatpush3.bf16.msra.mxu0 %v2645_v16  ;;  %v2691_v16 = vld [vmem:[#allocation11 + $0xe0] ss:$16 sps:$4 sm:$0xff]  }
 0x50b   : > { %2490 = vmatprep.subr.bf16.mxu0 %v3011_v3 }
 0x5c3   : > { %v904_v17 = vpop.f32.mrb[8].mxu1 }
 0x5c4   : > { %v910_v18 = vpack.c.bf16 %v904_v17, %v904_v17  ;;  %v2442_v19 = vpop.f32.mrb[9].mxu1  ;;  %v1079_v20 = vpop.f32.mrb[4].mxu0 }
 0x5c5   : > { %v1080_v21 = vadd.f32 %v1079_v20, %v3376_v54  ;;  %v907_v22 = vpop.f32.mrb[10].mxu1  ;;  %v2460_v23 = vpop.f32.mrb[5].mxu0 }
 0x5c6   : > { %912 = vst.msk [vmem:[#allocation2] sm:$0xf] %vm911_vm4, %v910_v18  ;;  %v2443_v24 = vpop.f32.mrb[11].mxu1  ;;  %v1082_v26 = vpop.f32.mrb[6].mxu0  ;;  %v2646_v18 = vld [vmem:[#allocation9 + $0x28] sm:$0xff]   ;;  %v2647_v23 = vld [vmem:[#allocation9 + $0x30] sm:$0xff]  }
 0x5c7   : > { %v2461_v27 = vpop.f32.mrb[7].mxu0  ;;  %v1085_v28 = vsel %vm850_vm3, %v1080_v21, -inf  ;;  %2491 = vmatpush3.bf16.msra.mxu0 %v2646_v18  ;;  %v2648_v26 = vld [vmem:[#allocation9 + $0x38] sm:$0xff]   ;;  %v2697_v18 = vld [vmem:[#allocation12 + $0x40] sm:$0xff]  }
 0x5c8   : > { %1086 = vmax.xlane.f32.xlu1 %v1085_v28  ;;  %2492 = vmatprep.subr.bf16.mxu0 %v3011_v3 }
 0x5cb   : > { %v959_v29 = vpop.f32.mrb[12].mxu1  ;;  %2493 = vmatpush3.bf16.msra.mxu0 %v2647_v23 }
 0x5cc   : > { %v960_v30 = vadd.f32 %v959_v29, %v3376_v54  ;;  %v2448_v31 = vpop.f32.mrb[13].mxu1  ;;  %v1198_v32 = vpop.f32.mrb[8].mxu0  ;;  %2494 = vmatprep.subr.bf16.mxu0 %v3011_v3 }
 0x5cd   : > { %v962_v33 = vpop.f32.mrb[14].mxu1  ;;  %v2472_v34 = vpop.f32.mrb[9].mxu0  ;;  %v1199_v35 = vadd.f32 %v1198_v32, %v3376_v54 }
 0x5ce   : > { %v2449_v36 = vpop.f32.mrb[15].mxu1  ;;  %v1201_v37 = vpop.f32.mrb[10].mxu0  ;;  %v965_v38 = vsel %vm850_vm3, %v960_v30, -inf }
 0x5cf   : > { %966 = vmax.xlane.f32.xlu0 %v965_v38  ;;  %v2473_v39 = vpop.f32.mrb[11].mxu0  ;;  %v1204_v40 = vsel %vm850_vm3, %v1199_v35, -inf  ;;  %2495 = vmatpush3.bf16.msra.mxu0 %v2648_v26 }
 0x5d3   : > { %1205 = vmax.xlane.f32.xlu0 %v1204_v40  ;;  %v2259_v40 = vld [vmem:[%s3517_s4] ss:$0 sm:$0xff] }
 0x655   : > { %v1087_v41 = vpop.xlane.xlu1 %1086 }
 0x656   : > { %v1088_v42 = vsub.f32 %v1080_v21, %v1087_v41 }
 0x658   : > { %v1089_v43 = vmul.f32 1.442695, %v1088_v42 }
 0x65a   : > { %2735 = vpow2.f32 %v1089_v43 }
 0x65c   : > { %v967_v44 = vpop.xlane.xlu0 %966 }
 0x65d   : > { %v968_v45 = vsub.f32 %v960_v30, %v967_v44 }
 0x65f   : > { %v969_v46 = vmul.f32 1.442695, %v968_v45 }
 0x660   : > { %v1206_v47 = vpop.xlane.xlu0 %1205 }
 0x661   : > { %2737 = vpow2.f32 %v969_v46  ;;  %v1207_v48 = vsub.f32 %v1199_v35, %v1206_v47  ;;  %v2649_v46 = vld [vmem:[#allocation11] ss:$16 sps:$4 sm:$0xff]   ;;  %v2651_v47 = vld [vmem:[#allocation11 + $0x4] ss:$16 sps:$4 sm:$0xff]  }
 0x663   : > { %v1208_v49 = vmul.f32 1.442695, %v1207_v48  ;;  %v2652_v48 = vld [vmem:[#allocation11 + $0x8] ss:$16 sps:$4 sm:$0xff]  }
 0x664   : > { %v2736_v50 = vpop.eup %2735 }
 0x665   : > { %2739 = vpow2.f32 %v1208_v49  ;;  %v1091_v52 = vsel %vm850_vm3, %v2736_v50, 0.0  ;;  %v2654_v49 = vld [vmem:[#allocation11 + $0xc] ss:$16 sps:$4 sm:$0xff]  }
 0x666   : > { %1092 = vadd.xlane.f32.xlu0 %v1091_v52  ;;  %1670 = vmatprep.subr.bf16.mxu0 %v2654_v49  ;;  %v2655_v52 = vld [vmem:[#allocation11 + $0x20] ss:$16 sps:$4 sm:$0xff]   ;;  %v2717_v49 = vld [vmem:[#allocation12 + $0x68] sm:$0xff]  }
 0x66b   : > { %v2738_v53 = vpop.eup %2737 }
 0x66c   : > { %v971_v54 = vsel %vm850_vm3, %v2738_v53, 0.0 }
 0x66d   : > { %972 = vadd.xlane.f32.xlu0 %v971_v54  ;;  %v2666_v54 = vld [vmem:[#allocation11 + $0x4c] ss:$16 sps:$4 sm:$0xff]  }
 0x66f   : > { %v2740_v55 = vpop.eup %2739 }
 0x670   : > { %v1210_v56 = vsel %vm850_vm3, %v2740_v55, 0.0 }
 0x671   : > { %1211 = vadd.xlane.f32.xlu1 %v1210_v56  ;;  %v2664_v56 = vld [vmem:[#allocation11 + $0x48] ss:$16 sps:$4 sm:$0xff]  }
 0x682   : > { %1097 = vrot.lane.b32.xlu1 %v3367_v51, %s3016_s20 }
 0x683   : > { %978 = vrot.lane.b32.xlu0 %v3367_v51, %s3014_s18 }
 0x686   : > { %1216 = vrot.lane.b32.xlu1 %v3367_v51, %s3015_s1 }
 0x6f3   : > { %v1093_v57 = vpop.xlane.xlu0 %1092 }
 0x6fa   : > { %v973_v58 = vpop.xlane.xlu0 %972 }
 0x6fb   : > { %2741 = vrcp.f32 %v973_v58 }
 0x6fc   : > { %2743 = vrcp.f32 %v1093_v57 }
 0x6fe   : > { %v979_v59 = vpop.permute.xlu0 %978  ;;  %v1212_v61 = vpop.xlane.xlu1 %1211 }
 0x6ff   : > { %v984_v60 = vsel %vm866_vm2, %v979_v59, 0  ;;  %2745 = vrcp.f32 %v1212_v61  ;;  %v2669_v61 = vld [vmem:[#allocation11 + $0x64] ss:$16 sps:$4 sm:$0xff]  }
 0x700   : > { %2451 = vmatpush3.bf16.msra.mxu1 %v984_v60 }
 0x701   : > { %2462 = vmatprep.subr.bf16.mxu1 %v3011_v3 }
 0x702   : > { %v1098_v1 = vpop.permute.xlu1 %1097 }
 0x703   : > { %v1103_v5 = vsel %vm866_vm2, %v1098_v1, 0  ;;  %v2670_v1 = vld [vmem:[#allocation11 + $0x68] ss:$16 sps:$4 sm:$0xff]  }
 0x705   : > { %v2742_v62 = vpop.eup %2741 }
 0x706   : > { %v975_v63 = vmul.f32 %v2742_v62, %v2738_v53  ;;  %v2744_v4 = vpop.eup %2743  ;;  %v1217_v6 = vpop.permute.xlu1 %1216  ;;  %v2663_v53 = vld [vmem:[#allocation11 + $0x44] ss:$16 sps:$4 sm:$0xff]   ;;  %v2672_v62 = vld [vmem:[#allocation11 + $0x6c] ss:$16 sps:$4 sm:$0xff]  }
 0x707   : > { %v1095_v51 = vmul.f32 %v2744_v4, %v2736_v50  ;;  %v1222_v9 = vsel %vm866_vm2, %v1217_v6, 0  ;;  %v2657_v50 = vld [vmem:[#allocation11 + $0x24] ss:$16 sps:$4 sm:$0xff]   ;;  %v2678_v4 = vld [vmem:[#allocation11 + $0x8c] ss:$16 sps:$4 sm:$0xff]  }
 0x708   : > { %v976_v2 = vpack.c.bf16 %v975_v63, %v975_v63  ;;  %v2667_v63 = vld [vmem:[#allocation11 + $0x60] ss:$16 sps:$4 sm:$0xff]   ;;  %v2681_v6 = vld [vmem:[#allocation11 + $0xa4] ss:$16 sps:$4 sm:$0xff]  }
 0x709   : > { %v1096_v7 = vpack.c.bf16 %v1095_v51, %v1095_v51  ;;  %v2746_v8 = vpop.eup %2745  ;;  %v2676_v51 = vld [vmem:[#allocation11 + $0x88] ss:$16 sps:$4 sm:$0xff]  }
 0x70a   : > { %2453 = vmatmul.mubr.msk.bf16.vlgmr.msra.gmra.mrb[16].mxu1 %vm850_vm3, %v976_v2  ;;  %v1214_v10 = vmul.f32 %v2746_v8, %v2740_v55  ;;  %v2661_v55 = vld [vmem:[#allocation11 + $0x40] ss:$16 sps:$4 sm:$0xff]   ;;  %v2675_v2 = vld [vmem:[#allocation11 + $0x84] ss:$16 sps:$4 sm:$0xff]  }
 0x70b   : > { %2463 = vmatpush3.bf16.msra.mxu1 %v1103_v5  ;;  %2464 = vmatprep.mubr.msk.bf16.mxu1 %vm3013_vm0, %v3011_v3  ;;  %v2673_v5 = vld [vmem:[#allocation11 + $0x80] ss:$16 sps:$4 sm:$0xff]  }
 0x70c   : > { %2474 = vmatprep.subr.bf16.mxu1 %v3011_v3  ;;  %v1215_v11 = vpack.c.bf16 %v1214_v10, %v1214_v10  ;;  %v2679_v8 = vld [vmem:[#allocation11 + $0xa0] ss:$16 sps:$4 sm:$0xff]   ;;  %v2687_v10 = vld [vmem:[#allocation11 + $0xc4] ss:$16 sps:$4 sm:$0xff]  }
 0x712   : > { %2465 = vmatmul.mubr.msk.bf16.vlgmr.msra.gmra.mrb[20].mxu1 %vm850_vm3, %v1096_v7  ;;  %v2684_v7 = vld [vmem:[#allocation11 + $0xac] ss:$16 sps:$4 sm:$0xff]  }
 0x713   : > { %2475 = vmatpush3.bf16.msra.mxu1 %v1222_v9  ;;  %2476 = vmatprep.mubr.msk.bf16.mxu1 %vm3013_vm0, %v3011_v3  ;;  %v2682_v9 = vld [vmem:[#allocation11 + $0xa8] ss:$16 sps:$4 sm:$0xff]  }
 0x714   : > { %1629 = vmatprep.subr.bf16.mxu1 %v2651_v47  ;;  %v2715_v47 = vld [vmem:[#allocation12 + $0x20] sm:$0xff]  }
 0x71a   : > { %2477 = vmatmul.mubr.msk.bf16.vlgmr.msra.gmra.mrb[24].mxu1 %vm850_vm3, %v1215_v11  ;;  %v2690_v11 = vld [vmem:[#allocation11 + $0xcc] ss:$16 sps:$4 sm:$0xff]  }
 0x71b   : > { %1661 = vmatprep.mubr.bf16.mxu1 %v3012_v25  ;;  %1630 = vmatpush1.bf16.msra.mxu1 %v2649_v46  ;;  %v2714_v46 = vld [vmem:[#allocation12 + $0xe0] sm:$0xff]  }
 0x71c   : > { %1631 = vmatprep.subr.bf16.mxu1 %v2657_v50  ;;  %v2718_v50 = vld [vmem:[#allocation12 + $0xe8] sm:$0xff]  }
 0x71f   : > { %1632 = vmatpush1.bf16.msra.mxu1 %v2655_v52  ;;  %v2720_v52 = vld [vmem:[#allocation12 + $0xa8] sm:$0xff]  }
 0x720   : > { %1633 = vmatprep.subr.bf16.mxu1 %v2663_v53  ;;  %v2722_v53 = vld [vmem:[#allocation12 + $0xf0] sm:$0xff]  }
 0x723   : > { %1634 = vmatpush1.bf16.msra.mxu1 %v2661_v55  ;;  %v2724_v55 = vld [vmem:[#allocation12 + $0xb0] sm:$0xff]  }
 0x724   : > { %1635 = vmatprep.subr.bf16.mxu1 %v2669_v61 }
 0x727   : > { %1636 = vmatpush1.bf16.msra.mxu1 %v2667_v63 }
 0x728   : > { %1637 = vmatprep.subr.bf16.mxu1 %v2675_v2 }
 0x72b   : > { %1638 = vmatpush1.bf16.msra.mxu1 %v2673_v5 }
 0x72c   : > { %1639 = vmatprep.subr.bf16.mxu1 %v2681_v6 }
 0x72f   : > { %1640 = vmatpush1.bf16.msra.mxu1 %v2679_v8 }
 0x730   : > { %1641 = vmatprep.subr.bf16.mxu1 %v2687_v10 }
 0x733   : > { %1642 = vmatpush1.bf16.msra.mxu1 %v2685_v12 }
 0x734   : > { %1643 = vmatprep.subr.bf16.mxu1 %v2693_v14 }
 0x737   : > { %1644 = vmatpush1.bf16.msra.mxu1 %v2691_v16 }
 0x738   : > { %2368 = vmatprep.subr.bf16.mxu1 %v2697_v18 }
 0x7dd   : > { %v1020_v17 = vpop.f32.mrb[16].mxu1 }
 0x7de   : > { %v2331_v19 = vpack.c.bf16 %v1020_v17, %v1020_v17  ;;  %v2454_v20 = vpop.f32.mrb[17].mxu1  ;;  %v2694_v17 = vld [vmem:[#allocation11 + $0xe8] ss:$16 sps:$4 sm:$0xff]  }
 0x7df   : > { %v1023_v21 = vpop.f32.mrb[18].mxu1 }
 0x7e0   : > { %1030 = vrot.lane.b32.xlu1 %v2331_v19, %s3015_s1  ;;  %v2455_v22 = vpop.f32.mrb[19].mxu1  ;;  %v2698_v19 = vld [vmem:[#allocation12 + $0xc0] sm:$0xff]   ;;  %s2919_s1 = scalar_lea.vmem %s3471_s21, 128 }
 0x7e1   : > { %p2920_p11 = scmp.ne.s32.totalorder %s3471_s21, %s2919_s1 }
 0x7e3   : > { %p2921_p5 = pnand %p2920_p11, %p3560_p13 }
 0x7e5   : > { %v1139_v24 = vpop.f32.mrb[20].mxu1  ;;  %p2922_p7 = pneg %p2921_p5 }
 0x7e6   : > { %v2332_v27 = vpack.c.bf16 %v1139_v24, %v1139_v24  ;;  %v2466_v28 = vpop.f32.mrb[21].mxu1  ;;  %v2260_v24 = vld [vmem:[%s3524_s11] ss:$0 sm:$0xff] }
 0x7e7   : > { %v1142_v29 = vpop.f32.mrb[22].mxu1 }
 0x7e8   : > { %1149 = vrot.lane.b32.xlu0 %v2332_v27, %s3016_s20  ;;  %v2467_v30 = vpop.f32.mrb[23].mxu1  ;;  %v2261_v27 = vld [vmem:[%s3525_s12] ss:$0 sm:$0xff]  ;;  %s2925_s20 = scalar_lea.vmem %s2924_s29, 256 }
 0x7e9   : > { %v2699_v30 = vld [vmem:[#allocation12] sm:$0xff]   ;;  %p2927_p1 = scmp.lt.s32.totalorder %s2925_s20, %s2919_s1 }
 0x7eb   : > { %p2928_p3 = por %p2927_p1, %p2926_p4 }
 0x7ed   : > { %v1258_v31 = vpop.f32.mrb[24].mxu1  ;;  %p2929_p9 = pnand %p2928_p3, %p2922_p7 }
 0x7ee   : > { %v2333_v32 = vpack.c.bf16 %v1258_v31, %v1258_v31  ;;  %v2478_v33 = vpop.f32.mrb[25].mxu1  ;;  %v2700_v31 = vld [vmem:[#allocation12 + $0x80] sm:$0xff]  }
 0x7ef   : > { %v1261_v34 = vpop.f32.mrb[26].mxu1  ;;  %v2701_v33 = vld [vmem:[#allocation12 + $0x48] sm:$0xff]  }
 0x7f0   : > { %1268 = vrot.lane.b32.xlu1 %v2333_v32, %s3014_s18  ;;  %v2479_v35 = vpop.f32.mrb[27].mxu1  ;;  %v2702_v34 = vld [vmem:[#allocation12 + $0xc8] sm:$0xff]   ;;  %s3557_s18 = sld [smem:[#allocation22_spill]] }
 0x7f1   : > { %v2703_v35 = vld [vmem:[#allocation12 + $0x8] sm:$0xff]  }
 0x852   : > { %v1031_v36 = vpop.permute.xlu1 %1030 }
 0x853   : > { %1034 = vst.msk [vmem:[#allocation2] sm:$0xf] %vm1033_vm5, %v1031_v36  ;;  %v2704_v36 = vld [vmem:[#allocation12 + $0x88] sm:$0xff]  }
 0x85a   : > { %v1150_v37 = vpop.permute.xlu0 %1149 }
 0x85b   : > { %1153 = vst.msk [vmem:[#allocation2] sm:$0xf] %vm1152_vm6, %v1150_v37  ;;  %v2705_v37 = vld [vmem:[#allocation12 + $0x50] sm:$0xff]  }
 0x862   : > { %v1269_v3 = vpop.permute.xlu1 %1268 }
 0x863   : > { %1272 = vst.msk [vmem:[#allocation2] sm:$0xf] %vm1271_vm7, %v1269_v3  ;;  %v2706_v3 = vld [vmem:[#allocation12 + $0xd0] sm:$0xff]  }
 0x86a   : > { %v1273_v38 = vld [vmem:[#allocation2] sm:$0xf] }
 0x86b   : > { %2497 = vmatmul.mubr.bf16.vlgmr.msra.gmra.mrb[12].mxu0 %v1273_v38  ;;  %v2707_v38 = vld [vmem:[#allocation12 + $0x10] sm:$0xff]  }
 0x86c   : > { %1702 = vmatprep.mubr.bf16.mxu0 %v3012_v25  ;;  %v2660_v25 = vld [vmem:[#allocation11 + $0x2c] ss:$16 sps:$4 sm:$0xff]   ;;  %1671 = vmatpush1.bf16.msra.mxu0 %v2652_v48  ;;  %v2716_v48 = vld [vmem:[#allocation12 + $0xa0] sm:$0xff]  }
 0x86d   : > { %1672 = vmatprep.subr.bf16.mxu0 %v2660_v25  ;;  %v2719_v25 = vld [vmem:[#allocation12 + $0x28] sm:$0xff]  }
 0x93e   : > { %v1372_v39 = vpop.f32.mrb[12].mxu0 }
 0x93f   : > { %v1378_v41 = vadd.f32 %v1372_v39, %v3337_v0  ;;  %v2498_v42 = vpop.f32.mrb[13].mxu0  ;;  %v2658_v0 = vld [vmem:[#allocation11 + $0x28] ss:$16 sps:$4 sm:$0xff]   ;;  %v2708_v39 = vld [vmem:[#allocation12 + $0x90] sm:$0xff]  }
 0x940   : > { %v1375_v43 = vpop.f32.mrb[14].mxu0  ;;  %1673 = vmatpush1.bf16.msra.mxu0 %v2658_v0  ;;  %v2711_v42 = vld [vmem:[#allocation12 + $0x18] sm:$0xff]   ;;  %v2721_v0 = vld [vmem:[#allocation12 + $0x70] sm:$0xff]  }
 0x941   : > { %v3446_v44 = vadd.f32 %v2259_v40, %v1378_v41  ;;  %v2499_v45 = vpop.f32.mrb[15].mxu0  ;;  %1674 = vmatprep.subr.bf16.mxu0 %v2666_v54  ;;  %v2709_v40 = vld [vmem:[#allocation12 + $0x58] sm:$0xff]   ;;  %v2723_v54 = vld [vmem:[#allocation12 + $0x30] sm:$0xff]  }
 0x942   : > { %v2710_v41 = vld [vmem:[#allocation12 + $0xd8] sm:$0xff]   ;;  %v2713_v45 = vld [vmem:[#allocation12 + $0x60] sm:$0xff]  }
 0x943   : > { %1389 = vadd.xlane.f32.xlu0 %v3446_v44  ;;  %v2712_v43 = vld [vmem:[#allocation12 + $0x98] sm:$0xff]  }
 0x944   : > { %1675 = vmatpush1.bf16.msra.mxu0 %v2664_v56  ;;  %v2725_v56 = vld [vmem:[#allocation12 + $0x78] sm:$0xff]  }
 0x945   : > { %1676 = vmatprep.subr.bf16.mxu0 %v2672_v62 }
 0x948   : > { %1677 = vmatpush1.bf16.msra.mxu0 %v2670_v1  ;;  %v1447_v1 = vld [vmem:[%s3557_s18] sm:$0xf]  ;;  %s2065_s18 = scalar_lea.sflag [#allocation5], %s3315_s13 }
 0x949   : > { %1678 = vmatprep.subr.bf16.mxu0 %v2678_v4 }
 0x94c   : > { %1679 = vmatpush1.bf16.msra.mxu0 %v2676_v51 }
 0x94d   : > { %1680 = vmatprep.subr.bf16.mxu0 %v2684_v7 }
 0x950   : > { %1681 = vmatpush1.bf16.msra.mxu0 %v2682_v9 }
 0x951   : > { %1682 = vmatprep.subr.bf16.mxu0 %v2690_v11 }
 0x954   : > { %1683 = vmatpush1.bf16.msra.mxu0 %v2688_v13 }
 0x955   : > { %1684 = vmatprep.subr.bf16.mxu0 %v2696_v15 }
 0x958   : > { %1685 = vmatpush1.bf16.msra.mxu0 %v2694_v17 }
 0x959   : > { %2390 = vmatprep.subr.bf16.mxu0 %v2698_v19 }
 0x9d0   : > { %v1390_v57 = vpop.xlane.xlu0 %1389 }
 0x9d1   : > { %v1391_v58 = vmul.f32 0.0078125, %v1390_v57  ;;  %v2726_v57 = vld [vmem:[#allocation12 + $0xf8] sm:$0xff]  }
 0x9d3   : > { %v1392_v59 = vsub.f32 %v3446_v44, %v1391_v58  ;;  %v2727_v58 = vld [vmem:[#allocation12 + $0x38] sm:$0xff]  }
 0x9d5   : > { %v1393_v60 = vmul.f32 %v1392_v59, %v1392_v59 }
 0x9d7   : > { %1394 = vadd.xlane.f32.xlu1 %v1393_v60  ;;  %v1449_v60 = vlaneseq }
 0x9d9   : > { %v1450_v61 = vshrl.u32 %v1449_v60, 7 }
 0x9db   : > { %v1451_v62 = vsub.s32 0, %v1450_v61  ;;  %v1459_v63 = vsub.s32 2, %v1450_v61  ;;  %v1455_v2 = vsub.s32 1, %v1450_v61  ;;  %v1463_v4 = vsub.s32 3, %v1450_v61 }
 0x9dd   : > { %v1452_v5 = vrot.slane %v1447_v1, %v1451_v62  ;;  %v1460_v51 = vrot.slane %v1447_v1, %v1459_v63  ;;  %v1456_v6 = vrot.slane %v1447_v1, %v1455_v2  ;;  %v1464_v7 = vrot.slane %v1447_v1, %v1463_v4 }
 0xa64   : > { %v1395_v20 = vpop.xlane.xlu1 %1394 }
 0xa65   : > { %v1396_v21 = vmul.f32 0.0078125, %v1395_v20 }
 0xa67   : > { %v1397_v22 = vadd.f32 1e-05, %v1396_v21 }
 0xa69   : > { %2747 = vrsqrt.f32 %v1397_v22 }
 0xa73   : > { %v2748_v23 = vpop.eup %2747 }
 0xa74   : > { %v1399_v26 = vmul.f32 %v2748_v23, %v1392_v59  ;;  %v2728_v59 = vld [vmem:[#allocation12 + $0xb8] sm:$0xff]  }
 0xa76   : > { %v1406_v28 = vmul.f32 %v2260_v24, %v1399_v26 }
 0xa78   : > { %v1413_v29 = vadd.f32 %v2261_v27, %v1406_v28 }
 0xa7a   : > { %v1414_v32 = vpack.c.bf16 %v1413_v29, %v1413_v29 }
 0xa7c   : > { %1662 = vmatmul.mubr.bf16.vlgmr.msra.gmra.mrb[28].mxu1 %v1414_v32  ;;  %1703 = vmatmul.mubr.bf16.vlgmr.msra.gmra.mrb[16].mxu0 %v1414_v32 }
 0xa7d   : > { %2369 = vmatpush3.bf16.msra.mxu1 %v2699_v30  ;;  %2391 = vmatpush3.bf16.msra.mxu0 %v2700_v31  ;;  %v2294_v31 = vld [vmem:[%s3558_s17] ss:$0 sm:$0xff] }
 0xa7e   : > { %2370 = vmatprep.subr.bf16.mxu1 %v2701_v33  ;;  %2392 = vmatprep.subr.bf16.mxu0 %v2702_v34 }
 0xa81   : > { %2371 = vmatpush3.bf16.msra.mxu1 %v2703_v35  ;;  %2393 = vmatpush3.bf16.msra.mxu0 %v2704_v36 }
 0xa82   : > { %2372 = vmatprep.subr.bf16.mxu1 %v2705_v37  ;;  %2394 = vmatprep.subr.bf16.mxu0 %v2706_v3 }
 0xa85   : > { %2373 = vmatpush3.bf16.msra.mxu1 %v2707_v38  ;;  %2395 = vmatpush3.bf16.msra.mxu0 %v2708_v39 }
 0xa86   : > { %2374 = vmatprep.subr.bf16.mxu1 %v2709_v40  ;;  %2396 = vmatprep.subr.bf16.mxu0 %v2710_v41 }
 0xa89   : > { %2375 = vmatpush3.bf16.msra.mxu1 %v2711_v42  ;;  %2397 = vmatpush3.bf16.msra.mxu0 %v2712_v43 }
 0xa8a   : > { %2376 = vmatprep.subr.bf16.mxu1 %v2713_v45  ;;  %2398 = vmatprep.subr.bf16.mxu0 %v2714_v46 }
 0xa8d   : > { %2377 = vmatpush3.bf16.msra.mxu1 %v2715_v47  ;;  %2399 = vmatpush3.bf16.msra.mxu0 %v2716_v48 }
 0xa8e   : > { %2378 = vmatprep.subr.bf16.mxu1 %v2717_v49  ;;  %2400 = vmatprep.subr.bf16.mxu0 %v2718_v50 }
 0xa91   : > { %2379 = vmatpush3.bf16.msra.mxu1 %v2719_v25  ;;  %2401 = vmatpush3.bf16.msra.mxu0 %v2720_v52 }
 0xa92   : > { %2380 = vmatprep.subr.bf16.mxu1 %v2721_v0  ;;  %2402 = vmatprep.subr.bf16.mxu0 %v2722_v53 }
 0xa95   : > { %2381 = vmatpush3.bf16.msra.mxu1 %v2723_v54  ;;  %2403 = vmatpush3.bf16.msra.mxu0 %v2724_v55 }
 0xa96   : > { %2382 = vmatprep.subr.bf16.mxu1 %v2725_v56  ;;  %2404 = vmatprep.subr.bf16.mxu0 %v2726_v57 }
 0xa99   : > { %2383 = vmatpush3.bf16.msra.mxu1 %v2727_v58  ;;  %2405 = vmatpush3.bf16.msra.mxu0 %v2728_v59 }
 0xb4f   : > { %v1663_v8 = vpop.f32.mrb[28].mxu1  ;;  %v1704_v9 = vpop.f32.mrb[16].mxu0 }
 0xb50   : > { %v1664_v10 = vadd.f32 %v1663_v8, %v1452_v5  ;;  %v1705_v11 = vadd.f32 %v1704_v9, %v1460_v51  ;;  %v1665_v12 = vpop.f32.mrb[29].mxu1  ;;  %v1706_v13 = vpop.f32.mrb[17].mxu0 }
 0xb51   : > { %v1666_v14 = vadd.f32 %v1665_v12, %v1456_v6  ;;  %v1707_v15 = vadd.f32 %v1706_v13, %v1464_v7  ;;  %v1667_v16 = vpop.f32.mrb[30].mxu1  ;;  %v1708_v17 = vpop.f32.mrb[18].mxu0 }
 0xb52   : > { %v1711_v18 = vmax.f32 %v1664_v10, 0.0  ;;  %v1713_v19 = vmax.f32 %v1705_v11, 0.0  ;;  %v1668_v20 = vpop.f32.mrb[31].mxu1  ;;  %v1709_v21 = vpop.f32.mrb[19].mxu0 }
 0xb53   : > { %v1712_v22 = vmax.f32 %v1666_v14, 0.0  ;;  %v1714_v23 = vmax.f32 %v1707_v15, 0.0 }
 0xb54   : > { %v1715_v27 = vpack.c.bf16 %v1711_v18, %v1711_v18  ;;  %v1717_v28 = vpack.c.bf16 %v1713_v19, %v1713_v19 }
 0xb55   : > { %v1716_v24 = vpack.c.bf16 %v1712_v22, %v1712_v22  ;;  %v1718_v26 = vpack.c.bf16 %v1714_v23, %v1714_v23 }
 0xb57   : > { %2014 = vmatprep.mubr.bf16.mxu1 %v1716_v24  ;;  %2054 = vmatprep.mubr.bf16.mxu0 %v1718_v26 }
 0xb58   : > { %2015 = vmatmul.mubr.bf16.vlgmr.msra.gmra.mrb[32].mxu1 %v1715_v27  ;;  %2055 = vmatmul.mubr.bf16.vlgmr.msra.gmra.mrb[20].mxu0 %v1717_v28 }
 0xc2b   : > { %v2384_v29 = vpop.f32.mrb[32].mxu1  ;;  %v2406_v30 = vpop.f32.mrb[20].mxu0 }
 0xc2c   : > { %v2385_v32 = vpop.f32.mrb[33].mxu1  ;;  %v2407_v33 = vpop.f32.mrb[21].mxu0 }
 0xc2d   : > { %v2386_v34 = vadd.f32 %v2385_v32, %v2384_v29  ;;  %v2408_v35 = vadd.f32 %v2407_v33, %v2406_v30  ;;  %v2387_v36 = vpop.f32.mrb[34].mxu1  ;;  %v2409_v37 = vpop.f32.mrb[22].mxu0 }
 0xc2e   : > { %v2388_v3 = vpop.f32.mrb[35].mxu1  ;;  %v2410_v38 = vpop.f32.mrb[23].mxu0 }
 0xc2f   : > { %v2017_v39 = vadd.f32 %v2386_v34, %v2294_v31 }
 0xc31   : > { %v2057_v40 = vadd.f32 %v2408_v35, %v2017_v39 }
 0xc33   : > { %v2062_v41 = vadd.f32 %v2057_v40, %v3446_v44 }
 0xc35   : > { %2063 = vst [vmem:[%s526_s3] sm:$0xff] %v2062_v41 }
 0xc36   : > { %2932 = shalt.err (!%p2929_p9)
}
 0xc37   : > { %s2933_s13 = scalar_lea.hbm %s3469_s6, 128  ;;  %s2937_s3 = scalar_lea.hbm %s3559_s22, 256 }
 0xc38   : > { %p2934_p6 = scmp.ne.s32.totalorder %s3469_s6, %s2933_s13  ;;  %p2938_p8 = scmp.lt.u32.totalorder %s3469_s6, %s3559_s22 }
 0xc39   : > { %p2939_p10 = scmp.lt.u32.totalorder %s2937_s3, %s2933_s13  ;;  %p2941_p11 = scmp.lt.u32.totalorder %s2933_s13, %s3469_s6 }
 0xc3a   : > { %p2935_p0 = pnand %p2934_p6, %p3560_p13 }
 0xc3b   : > { %p2940_p12 = por %p2939_p10, %p2938_p8 }
 0xc3c   : > { %p2936_p2 = pneg %p2935_p0 }
 0xc3d   : > { %p2942_p5 = por %p2941_p11, %p2940_p12 }
 0xc3f   : > { %p2943_p7 = pnand %p2942_p5, %p2936_p2 }
 0xc41   : > { %2946 = shalt.err (!%p2943_p7)
}
 0xc42   : > { %2522 = dma.vmem_to_hbm [thread:$0]  (%p3560_p13), %s3471_s21, 128, %s3469_s6, %s2065_s18  }
 0xc43 PF: > { %s2090_s1 = sand.u32 1, %s2985_s25   ;;  %p3561_p4 = scmp.ne.s32.totalorder %s3548_s30, 0 }
 0xc44   : > { %p3562_p1 = scmp.ge.s32.totalorder %s2997_s28, 2  ;;  %s2091_s14 = scalar_lea.sflag [#allocation5], %s2090_s1 }
 0xc46   : > { %p2545_p3 = pnand %p3562_p1, %p3561_p4 }
 0xc48   : > { %2980 = dma.done.wait (!%p2545_p3), %s2091_s14, 128  }
 0xc49   : > { %2982 = vsyncadd (!%p2545_p3), %s2091_s14, 4294967168  ;;  %p29_p9 = scmp.ge.s32.totalorder %s3245_s16, 4   ;;  %s3563_s25 = smov %s2989_s26 }
 0xc4a   : > { %s3564_s26 = smov %s2993_s27  ;;  %s3565_s27 = smov %s3257_s23 }
 0xc4b   : > { %s3566_s28 = smov %s3245_s16  ;;  %31 = sbr.rel (!%p29_p9) target bundleno = 14 (0xe), region = 137 }
 0xc52   :  { %2096 = vsyncpa [#allocation4], 1 }
 0xc53   :  { %2098 = vsyncpa [#allocation4 + $0x1], 1 }
 0xc54   :  { %2099 = vsyncpa [#allocation7], 1 }
 0xc55   :  { %2100 = vsyncpa [#allocation10], 1 }
 0xc56   :  { %2101 = vsyncpa [#allocation13], 1 }
 0xc57   :  { %2102 = vsyncpa [#allocation5], 1 }
 0xc58   :  { %2104 = vsyncpa [#allocation5 + $0x1], 1 }

</bundles_post_ra>
